<compile_context>
chip_gen: v7x
topology: tpu7x:2x2x1
jax: 0.10.0
libtpu: 0.0.40
codegen_flags: <defaults>
</compile_context>

<pallas_src>
import functools

import jax
import jax.numpy as jnp
from jax.experimental import pallas as pl
from jax.experimental.pallas import tpu as pltpu

_EPS = 1e-5
_SLOPE = 0.01                       # nn.LeakyReLU default negative_slope
_VMEM_LIMIT = 32 * 1024 * 1024      # within the scoped budget on all generations


def _round_up(x, m):
    return (x + m - 1) // m * m


def _row_tile(h):
    """Largest divisor of h that is <= 32 and gives >= 2 row blocks (else h)."""
    for t in range(min(h // 2, 32), 0, -1):
        if h % t == 0:
            return t
    return h


# --------------------------------------------------------------------------- #
# Kernel 1: conv (im2col, single MXU matmul) + per-sample BN partial stats.
# --------------------------------------------------------------------------- #
def _conv_stats_kernel(x_ref, w_ref, conv_ref, sum_ref, sq_ref, *, kh, kw, dil):
    # x_ref:    (1, Hp, Wp, Cin_pad)   zero-padded input frame (one batch element)
    # w_ref:    (kh*kw*Cin_pad, Cout_pad)
    # conv_ref: (1, Ho, Wo, Cout_pad)  conv output, f32
    # sum_ref:  (1, 1, Cout_pad)       per-sample per-channel sum
    # sq_ref:   (1, 1, Cout_pad)       per-sample per-channel sum of squares
    _, ho, wo, cout_p = conv_ref.shape
    cin_p = x_ref.shape[-1]

    x = x_ref[0]                                           # (Hp, Wp, Cin_pad)

    # im2col: every tap contributes a lane-aligned (Ho*Wo, Cin_pad) slab, so the
    # concat along lanes is 128-aligned (no masked lane shuffles).
    cols = []
    for i in range(kh):                                    # static -> unrolled
        for j in range(kw):
            win = x[i * dil:i * dil + ho, j * dil:j * dil + wo, :]
            cols.append(win.reshape(ho * wo, cin_p))
    patches = jnp.concatenate(cols, axis=-1)               # (Ho*Wo, kh*kw*Cin_pad)

    # One big matmul on the MXU with f32 accumulation (conv bias omitted: it
    # cancels exactly under training-mode BatchNorm).
    acc = jnp.dot(patches, w_ref[...], preferred_element_type=jnp.float32)

    conv_ref[...] = acc.reshape(1, ho, wo, cout_p)

    # Per-channel partial statistics for the global (two-pass) BatchNorm.
    s = jnp.sum(acc, axis=0, keepdims=True)                # (1, Cout_pad)
    ss = jnp.sum(acc * acc, axis=0, keepdims=True)         # (1, Cout_pad)
    sum_ref[...] = s[None]
    sq_ref[...] = ss[None]


# --------------------------------------------------------------------------- #
# Kernel 2: fused BN affine (pre-folded scale/shift) + LeakyReLU.
# --------------------------------------------------------------------------- #
def _bn_lrelu_kernel(conv_ref, scale_ref, shift_ref, o_ref, *, slope):
    scale = scale_ref[...].reshape(1, 1, 1, -1)
    shift = shift_ref[...].reshape(1, 1, 1, -1)
    y = conv_ref[...] * scale + shift
    o_ref[...] = jnp.where(y > 0.0, y, slope * y)


def conv_block_nhwc(x_nhwc, weight, gamma, beta, *, pad, dil,
                    matmul_dtype=jnp.float32):
    """ConvBlock on an NHWC activation.

    x_nhwc: (N, H, W, Cin) f32;  weight: (KH, KW, Cin, Cout)  (HWIO layout; a
    PyTorch OIHW weight should be transposed with (2, 3, 1, 0)).
    Returns (N, Ho, Wo, Cout) f32.  The conv bias is not taken: it cancels
    exactly under training-mode BatchNorm.
    """
    n, h, w, cin = x_nhwc.shape
    kh, kw, _, cout = weight.shape
    ho = h + 2 * pad - dil * (kh - 1)
    wo = w + 2 * pad - dil * (kw - 1)

    cin_p = _round_up(cin, 128)
    cout_p = _round_up(cout, 128)
    k = kh * kw * cin_p
    hp, wp = h + 2 * pad, w + 2 * pad

    # Wrapper glue (single fused XLA pad): spatial zero-pad + lane-dense channel pad.
    x_p = jnp.pad(x_nhwc.astype(jnp.float32),
                  ((0, 0), (pad, pad), (pad, pad), (0, cin_p - cin)))
    x_p = x_p.astype(matmul_dtype)
    w_p = jnp.pad(weight.astype(jnp.float32),
                  ((0, 0), (0, 0), (0, cin_p - cin), (0, cout_p - cout)))
    w2d = w_p.reshape(k, cout_p).astype(matmul_dtype)

    itemsize = jnp.dtype(matmul_dtype).itemsize

    # ---- pass 1: conv + partial stats, grid over batch ----
    k1_cost = pl.CostEstimate(
        flops=2 * n * ho * wo * k * cout_p + 3 * n * ho * wo * cout_p,
        transcendentals=0,
        bytes_accessed=(n * hp * wp * cin_p + k * cout_p) * itemsize
                       + (n * ho * wo * cout_p + 2 * n * cout_p) * 4)
    conv_out, s_part, ss_part = pl.pallas_call(
        functools.partial(_conv_stats_kernel, kh=kh, kw=kw, dil=dil),
        out_shape=(jax.ShapeDtypeStruct((n, ho, wo, cout_p), jnp.float32),
                   jax.ShapeDtypeStruct((n, 1, cout_p), jnp.float32),
                   jax.ShapeDtypeStruct((n, 1, cout_p), jnp.float32)),
        grid_spec=pltpu.PrefetchScalarGridSpec(
            num_scalar_prefetch=0,
            grid=(n,),
            in_specs=[
                pl.BlockSpec((1, hp, wp, cin_p), lambda b: (b, 0, 0, 0)),
                pl.BlockSpec((k, cout_p), lambda b: (0, 0)),
            ],
            out_specs=[
                pl.BlockSpec((1, ho, wo, cout_p), lambda b: (b, 0, 0, 0)),
                pl.BlockSpec((1, 1, cout_p), lambda b: (b, 0, 0)),
                pl.BlockSpec((1, 1, cout_p), lambda b: (b, 0, 0)),
            ]),
        compiler_params=pltpu.CompilerParams(
            dimension_semantics=("parallel",),
            vmem_limit_bytes=_VMEM_LIMIT),
        cost_estimate=k1_cost,
    )(x_p, w2d)

    # ---- tiny glue: global batch statistics -> folded BN scale/shift ----
    count = float(n * ho * wo)
    mean = jnp.sum(s_part, axis=0) / count                          # (1, Cout_pad)
    var = jnp.maximum(jnp.sum(ss_part, axis=0) / count - mean * mean, 0.0)  # biased
    gamma_p = jnp.pad(gamma.astype(jnp.float32), (0, cout_p - cout)).reshape(1, cout_p)
    beta_p = jnp.pad(beta.astype(jnp.float32), (0, cout_p - cout)).reshape(1, cout_p)
    scale = gamma_p * jax.lax.rsqrt(var + _EPS)                     # (1, Cout_pad)
    shift = beta_p - mean * scale

    # ---- pass 2: normalize + LeakyReLU, grid over (batch, row tiles) ----
    th = _row_tile(ho)
    n_rb = ho // th
    k2_cost = pl.CostEstimate(
        flops=3 * n * ho * wo * cout_p,
        transcendentals=0,
        bytes_accessed=2 * n * ho * wo * cout_p * 4 + 2 * cout_p * 4)
    y_pad = pl.pallas_call(
        functools.partial(_bn_lrelu_kernel, slope=_SLOPE),
        out_shape=jax.ShapeDtypeStruct((n, ho, wo, cout_p), jnp.float32),
        grid_spec=pltpu.PrefetchScalarGridSpec(
            num_scalar_prefetch=0,
            grid=(n, n_rb),
            in_specs=[
                pl.BlockSpec((1, th, wo, cout_p), lambda b, r: (b, r, 0, 0)),
                pl.BlockSpec((1, cout_p), lambda b, r: (0, 0)),
                pl.BlockSpec((1, cout_p), lambda b, r: (0, 0)),
            ],
            out_specs=pl.BlockSpec((1, th, wo, cout_p), lambda b, r: (b, r, 0, 0))),
        compiler_params=pltpu.CompilerParams(
            dimension_semantics=("parallel", "parallel"),
            vmem_limit_bytes=_VMEM_LIMIT),
        cost_estimate=k2_cost,
    )(conv_out, scale, shift)

    return y_pad[..., :cout]


def conv_block(x_nchw, weight, bias, gamma, beta, *, pad, dil,
               matmul_dtype=jnp.float32):
    """NCHW adapter matching the PyTorch ConvBlock I/O.

    `bias` is accepted for API parity but unused: with BatchNorm2d in training
    mode the conv bias cancels exactly (mean shifts by b, variance unchanged).
    """
    del bias
    x_nhwc = jnp.transpose(x_nchw, (0, 2, 3, 1))
    y = conv_block_nhwc(x_nhwc, weight, gamma, beta, pad=pad, dil=dil,
                        matmul_dtype=matmul_dtype)
    return jnp.transpose(y, (0, 3, 1, 2))


def _reference(x_nchw, weight, bias, gamma, beta, pad, dil):
    """Pure-JAX reference of Conv2d(+bias) -> BN(training stats) -> LeakyReLU."""
    x_nhwc = jnp.transpose(x_nchw, (0, 2, 3, 1))
    conv = jax.lax.conv_general_dilated(
        x_nhwc, weight, window_strides=(1, 1),
        padding=[(pad, pad), (pad, pad)], rhs_dilation=(dil, dil),
        dimension_numbers=("NHWC", "HWIO", "NHWC"),
        precision=jax.lax.Precision.HIGHEST) + bias
    mean = jnp.mean(conv, axis=(0, 1, 2))
    var = jnp.mean(jnp.square(conv - mean), axis=(0, 1, 2))
    y = (conv - mean) * jax.lax.rsqrt(var + _EPS) * gamma + beta
    y = jnp.where(y > 0, y, _SLOPE * y)
    return jnp.transpose(y, (0, 3, 1, 2))


if __name__ == "__main__":
    # Small shapes consistent with ConvBlock(in_ch=4, out_ch=8, k_size=3, pad=1, dil=1)
    N, Cin, Cout, H, W = 2, 4, 8, 16, 16
    KH = KW = 3
    PAD, DIL = 1, 1

    key = jax.random.PRNGKey(0)
    kx, kw_, kb, kg, kbt = jax.random.split(key, 5)
    x = jax.random.normal(kx, (N, Cin, H, W), dtype=jnp.float32)
    # Deterministic synthetic parameters (not a checkpoint load).
    weight = jax.random.normal(kw_, (KH, KW, Cin, Cout), dtype=jnp.float32) * 0.1
    bias = jax.random.normal(kb, (Cout,), dtype=jnp.float32) * 0.1
    gamma = 1.0 + 0.1 * jax.random.normal(kg, (Cout,), dtype=jnp.float32)
    beta = 0.1 * jax.random.normal(kbt, (Cout,), dtype=jnp.float32)

    y = conv_block(x, weight, bias, gamma, beta, pad=PAD, dil=DIL)
    y = jax.block_until_ready(y)
    assert y.shape == (N, Cout, H, W), y.shape

    # Sanity check against the pure-JAX reference (bias included there; it
    # cancels under training-mode BN, so outputs agree to fp tolerance).
    y_ref = _reference(x, weight, bias, gamma, beta, PAD, DIL)
    max_err = float(jnp.max(jnp.abs(y - y_ref)))
    assert max_err < 1e-2, f"max abs err vs reference: {max_err}"
    print("KERNEL_OK")
</pallas_src>

<mosaic_0001>
module attributes {stable_mosaic.version = 11 : i64} {
  func.func @_conv_stats_kernel(%arg0: i32, %arg1: memref<1x18x18x128xf32, #tpu.memory_space<vmem>>, %arg2: memref<1152x128xf32, #tpu.memory_space<vmem>>, %arg3: memref<1x16x16x128xf32, #tpu.memory_space<vmem>>, %arg4: memref<1x1x128xf32, #tpu.memory_space<vmem>>, %arg5: memref<1x1x128xf32, #tpu.memory_space<vmem>>) attributes {dimension_semantics = [#tpu.dimension_semantics<parallel>], iteration_bounds = array<i64: 2>, scalar_prefetch = 0 : i64, scratch_operands = 0 : i64, tpu.core_type = #tpu.core_type<tc>, window_params = [{transform_indices = @transform_0, window_bounds = array<i64: 1, 18, 18, 128>}, {pipeline_mode = #tpu.pipeline_mode<synchronous>, transform_indices = @transform_1, window_bounds = array<i64: 1152, 128>}, {transform_indices = @transform_2, window_bounds = array<i64: 1, 16, 16, 128>}, {transform_indices = @transform_3, window_bounds = array<i64: 1, 1, 128>}, {transform_indices = @transform_4, window_bounds = array<i64: 1, 1, 128>}]} {
    %c0 = arith.constant 0 : index
    %c0_0 = arith.constant 0 : index
    %c0_1 = arith.constant 0 : index
    %c0_2 = arith.constant 0 : index
    %0 = vector.load %arg1[%c0, %c0_0, %c0_1, %c0_2] : memref<1x18x18x128xf32, #tpu.memory_space<vmem>>, vector<1x18x18x128xf32>
    %1 = vector.shape_cast %0 : vector<1x18x18x128xf32> to vector<18x18x128xf32>
    %2 = vector.extract_strided_slice %1 {offsets = [0, 0, 0], sizes = [16, 16, 128], strides = [1, 1, 1]} : vector<18x18x128xf32> to vector<16x16x128xf32>
    %3 = vector.shape_cast %2 : vector<16x16x128xf32> to vector<256x128xf32>
    %4 = vector.extract_strided_slice %1 {offsets = [0, 1, 0], sizes = [16, 16, 128], strides = [1, 1, 1]} : vector<18x18x128xf32> to vector<16x16x128xf32>
    %5 = vector.shape_cast %4 : vector<16x16x128xf32> to vector<256x128xf32>
    %6 = vector.extract_strided_slice %1 {offsets = [0, 2, 0], sizes = [16, 16, 128], strides = [1, 1, 1]} : vector<18x18x128xf32> to vector<16x16x128xf32>
    %7 = vector.shape_cast %6 : vector<16x16x128xf32> to vector<256x128xf32>
    %8 = vector.extract_strided_slice %1 {offsets = [1, 0, 0], sizes = [16, 16, 128], strides = [1, 1, 1]} : vector<18x18x128xf32> to vector<16x16x128xf32>
    %9 = vector.shape_cast %8 : vector<16x16x128xf32> to vector<256x128xf32>
    %10 = vector.extract_strided_slice %1 {offsets = [1, 1, 0], sizes = [16, 16, 128], strides = [1, 1, 1]} : vector<18x18x128xf32> to vector<16x16x128xf32>
    %11 = vector.shape_cast %10 : vector<16x16x128xf32> to vector<256x128xf32>
    %12 = vector.extract_strided_slice %1 {offsets = [1, 2, 0], sizes = [16, 16, 128], strides = [1, 1, 1]} : vector<18x18x128xf32> to vector<16x16x128xf32>
    %13 = vector.shape_cast %12 : vector<16x16x128xf32> to vector<256x128xf32>
    %14 = vector.extract_strided_slice %1 {offsets = [2, 0, 0], sizes = [16, 16, 128], strides = [1, 1, 1]} : vector<18x18x128xf32> to vector<16x16x128xf32>
    %15 = vector.shape_cast %14 : vector<16x16x128xf32> to vector<256x128xf32>
    %16 = vector.extract_strided_slice %1 {offsets = [2, 1, 0], sizes = [16, 16, 128], strides = [1, 1, 1]} : vector<18x18x128xf32> to vector<16x16x128xf32>
    %17 = vector.shape_cast %16 : vector<16x16x128xf32> to vector<256x128xf32>
    %18 = vector.extract_strided_slice %1 {offsets = [2, 2, 0], sizes = [16, 16, 128], strides = [1, 1, 1]} : vector<18x18x128xf32> to vector<16x16x128xf32>
    %19 = vector.shape_cast %18 : vector<16x16x128xf32> to vector<256x128xf32>
    %20 = tpu.concatenate %3, %5, %7, %9, %11, %13, %15, %17, %19 in 1 : vector<256x128xf32>, vector<256x128xf32>, vector<256x128xf32>, vector<256x128xf32>, vector<256x128xf32>, vector<256x128xf32>, vector<256x128xf32>, vector<256x128xf32>, vector<256x128xf32> -> vector<256x1152xf32>
    %c0_3 = arith.constant 0 : index
    %c0_4 = arith.constant 0 : index
    %21 = vector.load %arg2[%c0_3, %c0_4] : memref<1152x128xf32, #tpu.memory_space<vmem>>, vector<1152x128xf32>
    %cst = arith.constant dense<0.000000e+00> : vector<256x128xf32>
    %22 = tpu.matmul %20, %21, %cst {dimension_numbers = #tpu.dot_dimension_numbers<[1], [0], [0], [1], [0, 0, 1, 1], [], []>} : vector<256x1152xf32>, vector<1152x128xf32>, vector<256x128xf32> -> vector<256x128xf32>
    %23 = vector.shape_cast %22 : vector<256x128xf32> to vector<1x16x16x128xf32>
    %c0_5 = arith.constant 0 : index
    %c0_6 = arith.constant 0 : index
    %c0_7 = arith.constant 0 : index
    %c0_8 = arith.constant 0 : index
    %24 = vector.load %arg3[%c0_5, %c0_6, %c0_7, %c0_8] : memref<1x16x16x128xf32, #tpu.memory_space<vmem>>, vector<1x16x16x128xf32>
    tpu.vector_store %arg3[%c0_5, %c0_6, %c0_7, %c0_8], %23 {strides = array<i32>} : memref<1x16x16x128xf32, #tpu.memory_space<vmem>>, vector<1x16x16x128xf32>,
    %cst_9 = arith.constant dense<0.000000e+00> : vector<128xf32>
    %25 = vector.multi_reduction <add>, %22, %cst_9 [0] : vector<256x128xf32> to vector<128xf32>
    %26 = vector.shape_cast %25 : vector<128xf32> to vector<1x128xf32>
    %27 = arith.mulf %22, %22 : vector<256x128xf32>
    %cst_10 = arith.constant dense<0.000000e+00> : vector<128xf32>
    %28 = vector.multi_reduction <add>, %27, %cst_10 [0] : vector<256x128xf32> to vector<128xf32>
    %29 = vector.shape_cast %28 : vector<128xf32> to vector<1x128xf32>
    %30 = vector.shape_cast %26 : vector<1x128xf32> to vector<1x1x128xf32>
    %c0_11 = arith.constant 0 : index
    %c0_12 = arith.constant 0 : index
    %c0_13 = arith.constant 0 : index
    %31 = vector.load %arg4[%c0_11, %c0_12, %c0_13] : memref<1x1x128xf32, #tpu.memory_space<vmem>>, vector<1x1x128xf32>
    tpu.vector_store %arg4[%c0_11, %c0_12, %c0_13], %30 {strides = array<i32>} : memref<1x1x128xf32, #tpu.memory_space<vmem>>, vector<1x1x128xf32>,
    %32 = vector.shape_cast %29 : vector<1x128xf32> to vector<1x1x128xf32>
    %c0_14 = arith.constant 0 : index
    %c0_15 = arith.constant 0 : index
    %c0_16 = arith.constant 0 : index
    %33 = vector.load %arg5[%c0_14, %c0_15, %c0_16] : memref<1x1x128xf32, #tpu.memory_space<vmem>>, vector<1x1x128xf32>
    tpu.vector_store %arg5[%c0_14, %c0_15, %c0_16], %32 {strides = array<i32>} : memref<1x1x128xf32, #tpu.memory_space<vmem>>, vector<1x1x128xf32>,
    return
  }
  func.func @transform_0(%arg0: i32) -> (i32, i32, i32, i32) {
    %c0_i32 = arith.constant 0 : i32
    %c0_i32_0 = arith.constant 0 : i32
    %c0_i32_1 = arith.constant 0 : i32
    %c0_i32_2 = arith.constant 0 : i32
    return %arg0, %c0_i32, %c0_i32_0, %c0_i32_1 : i32, i32, i32, i32
  }
  func.func @transform_1(%arg0: i32) -> (i32, i32) {
    %c0_i32 = arith.constant 0 : i32
    %c0_i32_0 = arith.constant 0 : i32
    %c0_i32_1 = arith.constant 0 : i32
    return %c0_i32, %c0_i32_0 : i32, i32
  }
  func.func @transform_2(%arg0: i32) -> (i32, i32, i32, i32) {
    %c0_i32 = arith.constant 0 : i32
    %c0_i32_0 = arith.constant 0 : i32
    %c0_i32_1 = arith.constant 0 : i32
    %c0_i32_2 = arith.constant 0 : i32
    return %arg0, %c0_i32, %c0_i32_0, %c0_i32_1 : i32, i32, i32, i32
  }
  func.func @transform_3(%arg0: i32) -> (i32, i32, i32) {
    %c0_i32 = arith.constant 0 : i32
    %c0_i32_0 = arith.constant 0 : i32
    %c0_i32_1 = arith.constant 0 : i32
    return %arg0, %c0_i32, %c0_i32_0 : i32, i32, i32
  }
  func.func @transform_4(%arg0: i32) -> (i32, i32, i32) {
    %c0_i32 = arith.constant 0 : i32
    %c0_i32_0 = arith.constant 0 : i32
    %c0_i32_1 = arith.constant 0 : i32
    return %arg0, %c0_i32, %c0_i32_0 : i32, i32, i32
  }
}

</mosaic_0001>

<bundles_post_ra>
// kernel: tpu_custom_call.1
= control target key start
LH: loop header
LB: loop body
LE: loop exit
PB: predicated region body
PF: predicated region fallthrough
CT: control target
= control target key end

     0   :  { %10 = vsyncpa [#allocation3], 0  ;;  %s4718_s0 = inlined_call_operand.vmem [shape: f32[2,18,18,128], index: 0, kind: input, shape index: {}]   ;;  %s4719_s1 = inlined_call_operand.vmem [shape: f32[1152,128], index: 1, kind: input, shape index: {}]   ;;  %s4720_s2 = inlined_call_operand.hbm [shape: f32[2,16,16,128], index: 2, kind: output, shape index: {0}]   ;;  %s4721_s3 = inlined_call_operand.hbm [shape: f32[2,1,128], index: 3, kind: output, shape index: {1}]   ;;  %s4722_s4 = inlined_call_operand.hbm [shape: f32[2,1,128], index: 4, kind: output, shape index: {2}]  }
   0x1   :  { %12 = vsyncpa [#allocation3 + $0x1], 0 }
   0x2   :  { %13 = vsyncpa [#allocation5], 0 }
   0x3   :  { %15 = vsyncpa [#allocation5 + $0x1], 0  ;;  %s2896_s15 = smov 0   ;;  %s2898_s16 = smov 0  }
   0x4   :  { %s2900_s17 = smov 0   ;;  %s2902_s18 = smov 0  }
   0x5 LB: > { %s2917_s19 = sadd.s32 4294967295, %s2863_s18   ;;  %s2146_s20 = sadd.s32 4294967294, %s2863_s18   ;;  %s2863_s18 = sphi %s2902_s18, %s4885_s18   ;;  %s2859_s17 = sphi %s2900_s17, %s4884_s17   ;;  %s2855_s16 = sphi %s2898_s16, %s4883_s16   ;;  %s2851_s15 = sphi %s2896_s15, %s4882_s15  }
   0x6   : > { %s2921_s21 = sadd.s32 1, %s2863_s18   ;;  %s75_s22 = sadd.s32 1, %s2859_s17 }
   0x7   : > { %s72_s23 = ssub.s32 %s2863_s18, %s2921_s21  ;;  %p85_p0 = scmp.ne.s32.totalorder %s2859_s17, %s2855_s16 }
   0x8   : > { %p73_p1 = scmp.eq.s32.totalorder %s72_s23, 0  ;;  %p86_p2 = scmp.eq.s32.totalorder %s2917_s19, 1 }
   0x9   : > { %p91_p3 = scmp.ne.s32.totalorder %s2855_s16, %s2851_s15  ;;  %p92_p4 = scmp.eq.s32.totalorder %s2146_s20, 1 }
   0xa   : > { %s2934_s24 = scalar_select %p73_p1, %s2859_s17, %s75_s22  }
   0xb   : > { %p2936_p5 = por %p86_p2, %p85_p0  ;;  %p2940_p6 = por %p92_p4, %p91_p3 }
   0xc   : > { %p2149_p7 = scmp.ge.s32.totalorder %s2863_s18, 1  ;;  %p173_p8 = scmp.lt.s32.totalorder %s2863_s18, 3 }
   0xe   : > { %p174_p9 = pnand %p2149_p7, %p173_p8 }
  0x10   : > { %177 = sbr.rel (%p174_p9) target bundleno = 699 (0x2bb), region = 28 }
  0x17   : > { %v574_v0 = vld [vmem:[%s4719_s1] sm:$0xff]  ;;  %v575_v1 = vld [vmem:[%s4719_s1 + $0x8] sm:$0xff]  ;;  %v4723_v3 = vmov 0.0|0.0   ;;  %v576_v6 = vld [vmem:[%s4719_s1 + $0x10] sm:$0xff]  ;;  %p207_p10 = scmp.lt.s32.totalorder %s2917_s19, 1  ;;  %vm314_vm0 = vcmask 1046528  }
  0x18   : > { %v606_v2 = vld [vmem:[%s4719_s1 + $0x100] sm:$0xff]  ;;  %2288 = vmatprep.subr.bf16.mxu1 %v4723_v3  ;;  %2336 = vmatprep.subr.bf16.mxu0 %v4723_v3  ;;  %v2289_v4 = vpack.c.bf16 %v575_v1, %v574_v0  ;;  %v607_v5 = vld [vmem:[%s4719_s1 + $0x108] sm:$0xff]  ;;  %v577_v7 = vld [vmem:[%s4719_s1 + $0x18] sm:$0xff]  ;;  %vm427_vm1 = vcmask 1045504   ;;  %s2159_s8 = sshll.u32 %s2917_s19, 12  ;;  %s2866_s22 = smov [#allocation2]  }
  0x19   : > { %v2337_v8 = vpack.c.bf16 %v607_v5, %v606_v2  ;;  %v608_v9 = vld [vmem:[%s4719_s1 + $0x110] sm:$0xff]  ;;  %v609_v10 = vld [vmem:[%s4719_s1 + $0x118] sm:$0xff]  ;;  %v2292_v11 = vpack.c.bf16 %v577_v7, %v576_v6  ;;  %v578_v13 = vld [vmem:[%s4719_s1 + $0x20] sm:$0xff]  ;;  %s208_s27 = scalar_select %p207_p10, %s2917_s19, 1 }
  0x1a   : > { %2290 = vmatpush1.bf16.msra.mxu1 %v2289_v4  ;;  %v2340_v12 = vpack.c.bf16 %v609_v10, %v608_v9  ;;  %v579_v14 = vld [vmem:[%s4719_s1 + $0x28] sm:$0xff]  ;;  %v610_v15 = vld [vmem:[%s4719_s1 + $0x120] sm:$0xff]  ;;  %v580_v19 = vld [vmem:[%s4719_s1 + $0x30] sm:$0xff]  ;;  %s4527_s12 = scalar_lea.hbm %s4720_s2, %s2159_s8  ;;  %s2745_s23 = sshll.u32 %s2866_s22, 4  ;;  %s2746_s23 = int_to_ptr.vmem [resolvable:$false] %s2745_s23 }
  0x1b   : > { %2338 = vmatpush1.bf16.msra.mxu0 %v2337_v8  ;;  %2291 = vmatprep.subr.bf16.mxu1 %v4723_v3  ;;  %v611_v16 = vld [vmem:[%s4719_s1 + $0x128] sm:$0xff]  ;;  %v2295_v17 = vpack.c.bf16 %v579_v14, %v578_v13  ;;  %v581_v20 = vld [vmem:[%s4719_s1 + $0x38] sm:$0xff]  ;;  %v612_v21 = vld [vmem:[%s4719_s1 + $0x130] sm:$0xff]  ;;  %s2680_s10 = smul.u32 432, %s208_s27  ;;  %s2747_s27 = scalar_lea.vmem %s2746_s23, 8192 }
  0x1c   : > { %2339 = vmatprep.subr.bf16.mxu0 %v4723_v3  ;;  %v2343_v18 = vpack.c.bf16 %v611_v16, %v610_v15  ;;  %v613_v22 = vld [vmem:[%s4719_s1 + $0x138] sm:$0xff]  ;;  %v2298_v23 = vpack.c.bf16 %v581_v20, %v580_v19  ;;  %v582_v25 = vld [vmem:[%s4719_s1 + $0x40] sm:$0xff]  ;;  %v583_v26 = vld [vmem:[%s4719_s1 + $0x48] sm:$0xff] }
  0x1d   : > { %v2346_v24 = vpack.c.bf16 %v613_v22, %v612_v21  ;;  %v614_v27 = vld [vmem:[%s4719_s1 + $0x140] sm:$0xff]  ;;  %v615_v28 = vld [vmem:[%s4719_s1 + $0x148] sm:$0xff]  ;;  %v2301_v29 = vpack.c.bf16 %v583_v26, %v582_v25  ;;  %v584_v31 = vld [vmem:[%s4719_s1 + $0x50] sm:$0xff]  ;;  %s3033_s5 = scalar_lea.vmem %s4718_s0, %s2680_s10 }
  0x1e   : > { %2293 = vmatpush1.bf16.msra.mxu1 %v2292_v11  ;;  %v2349_v30 = vpack.c.bf16 %v615_v28, %v614_v27  ;;  %v585_v32 = vld [vmem:[%s4719_s1 + $0x58] sm:$0xff]  ;;  %v616_v33 = vld [vmem:[%s4719_s1 + $0x150] sm:$0xff]  ;;  %v586_v37 = vld [vmem:[%s4719_s1 + $0x60] sm:$0xff] }
  0x1f   : > { %2341 = vmatpush1.bf16.msra.mxu0 %v2340_v12  ;;  %2294 = vmatprep.subr.bf16.mxu1 %v4723_v3  ;;  %v617_v34 = vld [vmem:[%s4719_s1 + $0x158] sm:$0xff]  ;;  %v2304_v35 = vpack.c.bf16 %v585_v32, %v584_v31  ;;  %v587_v38 = vld [vmem:[%s4719_s1 + $0x68] sm:$0xff]  ;;  %v618_v39 = vld [vmem:[%s4719_s1 + $0x160] sm:$0xff] }
  0x20   : > { %2342 = vmatprep.subr.bf16.mxu0 %v4723_v3  ;;  %v2352_v36 = vpack.c.bf16 %v617_v34, %v616_v33  ;;  %v619_v40 = vld [vmem:[%s4719_s1 + $0x168] sm:$0xff]  ;;  %v3050_v41 = vld [vmem:[%s3033_s5] sm:$0xff]  ;;  %v3058_v45 = vld [vmem:[%s3033_s5 + $0x18] sm:$0xff]  ;;  %v2307_v46 = vpack.c.bf16 %v587_v38, %v586_v37 }
  0x21   : > { %v3053_v42 = vld [vmem:[%s3033_s5 + $0x8] sm:$0xff]  ;;  %v315_v43 = vrot.slane %v3050_v41, 1  ;;  %1007 = vmatprep.mubr.f32.mxu0 %v3058_v45  ;;  %v2355_v47 = vpack.c.bf16 %v619_v40, %v618_v39  ;;  %v588_v48 = vld [vmem:[%s4719_s1 + $0x70] sm:$0xff]  ;;  %v589_v49 = vld [vmem:[%s4719_s1 + $0x78] sm:$0xff] }
  0x22   : > { %2296 = vmatpush1.bf16.msra.mxu1 %v2295_v17  ;;  %v316_v44 = vrot.slane %v3053_v42, 1  ;;  %v620_v51 = vld [vmem:[%s4719_s1 + $0x170] sm:$0xff]  ;;  %v621_v52 = vld [vmem:[%s4719_s1 + $0x178] sm:$0xff]  ;;  %v2310_v53 = vpack.c.bf16 %v589_v49, %v588_v48  ;;  %v590_v55 = vld [vmem:[%s4719_s1 + $0x80] sm:$0xff] }
  0x23   : > { %2344 = vmatpush1.bf16.msra.mxu0 %v2343_v18  ;;  %2297 = vmatprep.subr.bf16.mxu1 %v4723_v3  ;;  %v2358_v54 = vpack.c.bf16 %v621_v52, %v620_v51  ;;  %v591_v56 = vld [vmem:[%s4719_s1 + $0x88] sm:$0xff]  ;;  %v622_v57 = vld [vmem:[%s4719_s1 + $0x180] sm:$0xff]  ;;  %v592_v61 = vld [vmem:[%s4719_s1 + $0x90] sm:$0xff] }
  0x24   : > { %2345 = vmatprep.subr.bf16.mxu0 %v4723_v3  ;;  %v317_v50 = vsel %vm314_vm0, %v315_v43, %v316_v44  ;;  %v623_v58 = vld [vmem:[%s4719_s1 + $0x188] sm:$0xff]  ;;  %v2313_v59 = vpack.c.bf16 %v591_v56, %v590_v55  ;;  %v593_v62 = vld [vmem:[%s4719_s1 + $0x98] sm:$0xff]  ;;  %v624_v63 = vld [vmem:[%s4719_s1 + $0x190] sm:$0xff]  ;;  %v428_v43 = vrot.slane %v3050_v41, 2 }
  0x25   : > { %782 = vmatprep.mubr.f32.mxu1 %v317_v50  ;;  %v2361_v60 = vpack.c.bf16 %v623_v58, %v622_v57  ;;  %v625_v0 = vld [vmem:[%s4719_s1 + $0x198] sm:$0xff]  ;;  %v2316_v1 = vpack.c.bf16 %v593_v62, %v592_v61  ;;  %v594_v4 = vld [vmem:[%s4719_s1 + $0xa0] sm:$0xff]  ;;  %v595_v5 = vld [vmem:[%s4719_s1 + $0xa8] sm:$0xff] }
  0x26   : > { %2299 = vmatpush1.bf16.msra.mxu1 %v2298_v23  ;;  %v2364_v2 = vpack.c.bf16 %v625_v0, %v624_v63  ;;  %v626_v6 = vld [vmem:[%s4719_s1 + $0x1a0] sm:$0xff]  ;;  %v627_v7 = vld [vmem:[%s4719_s1 + $0x1a8] sm:$0xff]  ;;  %v2319_v8 = vpack.c.bf16 %v595_v5, %v594_v4  ;;  %v596_v10 = vld [vmem:[%s4719_s1 + $0xb0] sm:$0xff]  ;;  %v433_v0 = vrot.slane %v3058_v45, 2 }
  0x27   : > { %2347 = vmatpush1.bf16.msra.mxu0 %v2346_v24  ;;  %2300 = vmatprep.subr.bf16.mxu1 %v4723_v3  ;;  %v2367_v9 = vpack.c.bf16 %v627_v7, %v626_v6  ;;  %v597_v11 = vld [vmem:[%s4719_s1 + $0xb8] sm:$0xff]  ;;  %v628_v12 = vld [vmem:[%s4719_s1 + $0x1b0] sm:$0xff]  ;;  %v598_v16 = vld [vmem:[%s4719_s1 + $0xc0] sm:$0xff] }
  0x28   : > { %2348 = vmatprep.subr.bf16.mxu0 %v4723_v3  ;;  %v629_v13 = vld [vmem:[%s4719_s1 + $0x1b8] sm:$0xff]  ;;  %v2322_v14 = vpack.c.bf16 %v597_v11, %v596_v10  ;;  %v599_v17 = vld [vmem:[%s4719_s1 + $0xc8] sm:$0xff]  ;;  %v630_v18 = vld [vmem:[%s4719_s1 + $0x1c0] sm:$0xff] }
  0x29   : > { %v2370_v15 = vpack.c.bf16 %v629_v13, %v628_v12  ;;  %v631_v19 = vld [vmem:[%s4719_s1 + $0x1c8] sm:$0xff]  ;;  %v2325_v20 = vpack.c.bf16 %v599_v17, %v598_v16  ;;  %v600_v22 = vld [vmem:[%s4719_s1 + $0xd0] sm:$0xff]  ;;  %v601_v23 = vld [vmem:[%s4719_s1 + $0xd8] sm:$0xff] }
  0x2a   : > { %2302 = vmatpush1.bf16.msra.mxu1 %v2301_v29  ;;  %v2373_v21 = vpack.c.bf16 %v631_v19, %v630_v18  ;;  %v632_v24 = vld [vmem:[%s4719_s1 + $0x1d0] sm:$0xff]  ;;  %v633_v25 = vld [vmem:[%s4719_s1 + $0x1d8] sm:$0xff]  ;;  %v2328_v26 = vpack.c.bf16 %v601_v23, %v600_v22  ;;  %v602_v28 = vld [vmem:[%s4719_s1 + $0xe0] sm:$0xff] }
  0x2b   : > { %2350 = vmatpush1.bf16.msra.mxu0 %v2349_v30  ;;  %2303 = vmatprep.subr.bf16.mxu1 %v4723_v3  ;;  %v2376_v27 = vpack.c.bf16 %v633_v25, %v632_v24  ;;  %v603_v29 = vld [vmem:[%s4719_s1 + $0xe8] sm:$0xff]  ;;  %v634_v30 = vld [vmem:[%s4719_s1 + $0x1e0] sm:$0xff]  ;;  %v604_v34 = vld [vmem:[%s4719_s1 + $0xf0] sm:$0xff] }
  0x2c   : > { %2351 = vmatprep.subr.bf16.mxu0 %v4723_v3  ;;  %v635_v31 = vld [vmem:[%s4719_s1 + $0x1e8] sm:$0xff]  ;;  %v2331_v32 = vpack.c.bf16 %v603_v29, %v602_v28  ;;  %v637_v37 = vld [vmem:[%s4719_s1 + $0x1f8] sm:$0xff]  ;;  %v214_v38 = vld [vmem:[%s3033_s5 + $0x10] sm:$0x3] }
  0x2d   : > { %v2379_v33 = vpack.c.bf16 %v635_v31, %v634_v30  ;;  %v639_v48 = vld [vmem:[%s4719_s1 + $0x208] sm:$0xff]  ;;  %v318_v49 = vrot.slane %v214_v38, 1  ;;  %v3202_v50 = vld [vmem:[%s3033_s5 + $0x20] sm:$0xff]  ;;  %v431_v57 = vrot.slane %v214_v38, 2  ;;  %v673_v63 = vld [vmem:[%s4719_s1 + $0x318] sm:$0xff] }
  0x2e   : > { %2305 = vmatpush1.bf16.msra.mxu1 %v2304_v35  ;;  %v605_v35 = vld [vmem:[%s4719_s1 + $0xf8] sm:$0xff]  ;;  %v670_v51 = vld [vmem:[%s4719_s1 + $0x300] sm:$0xff]  ;;  %v671_v52 = vld [vmem:[%s4719_s1 + $0x308] sm:$0xff]  ;;  %v321_v58 = vrot.slane %v3202_v50, 1 }
  0x2f   : > { %2353 = vmatpush1.bf16.msra.mxu0 %v2352_v36  ;;  %2306 = vmatprep.subr.bf16.mxu1 %v4723_v3  ;;  %v636_v36 = vld [vmem:[%s4719_s1 + $0x1f0] sm:$0xff]  ;;  %v2334_v39 = vpack.c.bf16 %v605_v35, %v604_v34  ;;  %v319_v56 = vsel %vm314_vm0, %v316_v44, %v318_v49  ;;  %v217_v61 = vld [vmem:[%s3033_s5 + $0x28] sm:$0x3]  ;;  %v3225_v62 = vpack.c.bf16 %v671_v52, %v670_v51  ;;  %v3246_v7 = vld [vmem:[%s3033_s5 + $0x38] sm:$0xff] }
  0x30   : > { %2354 = vmatprep.subr.bf16.mxu0 %v4723_v3  ;;  %v2382_v40 = vpack.c.bf16 %v637_v37, %v636_v36  ;;  %v672_v44 = vld [vmem:[%s4719_s1 + $0x310] sm:$0xff]  ;;  %v323_v6 = vrot.slane %v217_v61, 1  ;;  %v674_v11 = vld [vmem:[%s4719_s1 + $0x320] sm:$0xff]  ;;  %v675_v12 = vld [vmem:[%s4719_s1 + $0x328] sm:$0xff]  ;;  %v326_v16 = vrot.slane %v3246_v7, 1  ;;  %v439_v25 = vrot.slane %v3246_v7, 2 }
  0x31   : > { %v3242_v4 = vld [vmem:[%s3033_s5 + $0x30] sm:$0xff]  ;;  %v3255_v10 = vpack.c.bf16 %v673_v63, %v672_v44  ;;  %v220_v18 = vld [vmem:[%s3033_s5 + $0x40] sm:$0x3]  ;;  %v677_v23 = vld [vmem:[%s4719_s1 + $0x338] sm:$0xff] }
  0x32   : > { %2308 = vmatpush1.bf16.msra.mxu1 %v2307_v46  ;;  %v429_v46 = vrot.slane %v3053_v42, 2  ;;  %v644_v19 = vld [vmem:[%s4719_s1 + $0x230] sm:$0xff]  ;;  %v438_v24 = vrot.slane %v3242_v4, 2  ;;  %v328_v28 = vrot.slane %v220_v18, 1  ;;  %v646_v31 = vld [vmem:[%s4719_s1 + $0x240] sm:$0xff]  ;;  %v679_v35 = vld [vmem:[%s4719_s1 + $0x348] sm:$0xff] }
  0x33   : > { %2356 = vmatpush1.bf16.msra.mxu0 %v2355_v47  ;;  %2309 = vmatprep.subr.bf16.mxu1 %v4723_v3  ;;  %v638_v47 = vld [vmem:[%s4719_s1 + $0x200] sm:$0xff]  ;;  %v676_v22 = vld [vmem:[%s4719_s1 + $0x330] sm:$0xff]  ;;  %v441_v37 = vrot.slane %v220_v18, 2  ;;  %v681_v51 = vld [vmem:[%s4719_s1 + $0x358] sm:$0xff] }
  0x34   : > { %2357 = vmatprep.subr.bf16.mxu0 %v4723_v3  ;;  %v430_v55 = vsel %vm427_vm1, %v428_v43, %v429_v46  ;;  %v3309_v30 = vld [vmem:[%s3033_s5 + $0x50] sm:$0xff]  ;;  %v678_v34 = vld [vmem:[%s4719_s1 + $0x340] sm:$0xff]  ;;  %v3332_v36 = vsel %vm427_vm1, %v438_v24, %v439_v25  ;;  %v3336_v38 = vsel %vm314_vm0, %v326_v16, %v328_v28 }
  0x35   : > { %v3349_v49 = vpack.c.bf16 %v679_v35, %v678_v34  ;;  %v3362_v52 = vsel %vm427_vm1, %v439_v25, %v441_v37  ;;  %v682_v63 = vld [vmem:[%s4719_s1 + $0x360] sm:$0xff] }
  0x36   : > { %2311 = vmatpush1.bf16.msra.mxu1 %v2310_v53  ;;  %v2385_v53 = vpack.c.bf16 %v639_v48, %v638_v47  ;;  %v648_v47 = vld [vmem:[%s4719_s1 + $0x250] sm:$0xff]  ;;  %v649_v48 = vld [vmem:[%s4719_s1 + $0x258] sm:$0xff]  ;;  %v3439_v24 = vld [vmem:[%s3033_s5 + $0x80] sm:$0xff] }
  0x37   : > { %2359 = vmatpush1.bf16.msra.mxu0 %v2358_v54  ;;  %2312 = vmatprep.subr.bf16.mxu1 %v4723_v3  ;;  %v320_v54 = vrot.slane %v3058_v45, 1  ;;  %v654_v25 = vld [vmem:[%s4719_s1 + $0x280] sm:$0xff]  ;;  %v341_v37 = vrot.slane %v3439_v24, 1 }
  0x38   : > { %2360 = vmatprep.subr.bf16.mxu0 %v4723_v3 }
  0x3a   : > { %2314 = vmatpush1.bf16.msra.mxu1 %v2313_v59  ;;  %v640_v59 = vld [vmem:[%s4719_s1 + $0x210] sm:$0xff] }
  0x3b   : > { %2362 = vmatpush1.bf16.msra.mxu0 %v2361_v60  ;;  %2315 = vmatprep.subr.bf16.mxu1 %v4723_v3  ;;  %v641_v60 = vld [vmem:[%s4719_s1 + $0x218] sm:$0xff] }
  0x3c   : > { %2363 = vmatprep.subr.bf16.mxu0 %v4723_v3  ;;  %v2388_v5 = vpack.c.bf16 %v641_v60, %v640_v59  ;;  %v3374_v59 = vld [vmem:[%s3033_s5 + $0x68] sm:$0xff]  ;;  %v650_v60 = vld [vmem:[%s4719_s1 + $0x260] sm:$0xff] }
  0x3e   : > { %2317 = vmatpush1.bf16.msra.mxu1 %v2316_v1  ;;  %v434_v1 = vrot.slane %v3202_v50, 2 }
  0x3f   : > { %2365 = vmatpush1.bf16.msra.mxu0 %v2364_v2  ;;  %2318 = vmatprep.subr.bf16.mxu1 %v4723_v3  ;;  %v432_v2 = vsel %vm427_vm1, %v429_v46, %v431_v57  ;;  %v223_v46 = vld [vmem:[%s3033_s5 + $0x58] sm:$0x3] }
  0x40   : > { %2366 = vmatprep.subr.bf16.mxu0 %v4723_v3  ;;  %v3267_v13 = vsel %vm427_vm1, %v433_v0, %v434_v1  ;;  %v333_v57 = vrot.slane %v223_v46, 1  ;;  %v683_v0 = vld [vmem:[%s4719_s1 + $0x368] sm:$0xff] }
  0x42   : > { %2320 = vmatpush1.bf16.msra.mxu1 %v2319_v8  ;;  %v642_v8 = vld [vmem:[%s4719_s1 + $0x220] sm:$0xff] }
  0x43   : > { %2368 = vmatpush1.bf16.msra.mxu0 %v2367_v9  ;;  %2321 = vmatprep.subr.bf16.mxu1 %v4723_v3  ;;  %v643_v9 = vld [vmem:[%s4719_s1 + $0x228] sm:$0xff] }
  0x44   : > { %2369 = vmatprep.subr.bf16.mxu0 %v4723_v3  ;;  %v2391_v17 = vpack.c.bf16 %v643_v9, %v642_v8  ;;  %v226_v8 = vld [vmem:[%s3033_s5 + $0x70] sm:$0x3] }
  0x45   : > { %v652_v9 = vld [vmem:[%s4719_s1 + $0x270] sm:$0xff]  ;;  %v451_v34 = vrot.slane %v226_v8, 2 }
  0x46   : > { %2323 = vmatpush1.bf16.msra.mxu1 %v2322_v14  ;;  %v436_v14 = vrot.slane %v217_v61, 2  ;;  %v651_v61 = vld [vmem:[%s4719_s1 + $0x268] sm:$0xff] }
  0x47   : > { %2371 = vmatpush1.bf16.msra.mxu0 %v2370_v15  ;;  %2324 = vmatprep.subr.bf16.mxu1 %v4723_v3  ;;  %v325_v15 = vrot.slane %v3242_v4, 1 }
  0x48   : > { %2372 = vmatprep.subr.bf16.mxu0 %v4723_v3 }
  0x4a   : > { %2326 = vmatpush1.bf16.msra.mxu1 %v2325_v20  ;;  %v645_v20 = vld [vmem:[%s4719_s1 + $0x238] sm:$0xff] }
  0x4b   : > { %2374 = vmatpush1.bf16.msra.mxu0 %v2373_v21  ;;  %2327 = vmatprep.subr.bf16.mxu1 %v4723_v3  ;;  %v3284_v21 = vpack.c.bf16 %v675_v12, %v674_v11  ;;  %v2394_v29 = vpack.c.bf16 %v645_v20, %v644_v19  ;;  %v653_v11 = vld [vmem:[%s4719_s1 + $0x278] sm:$0xff]  ;;  %v3414_v12 = vpack.c.bf16 %v683_v0, %v682_v63  ;;  %v658_v63 = vld [vmem:[%s4719_s1 + $0x2a0] sm:$0xff]  ;;  %v659_v0 = vld [vmem:[%s4719_s1 + $0x2a8] sm:$0xff] }
  0x4c   : > { %2375 = vmatprep.subr.bf16.mxu0 %v4723_v3  ;;  %v3436_v20 = vld [vmem:[%s3033_s5 + $0x78] sm:$0xff] }
  0x4d   : > { %v340_v35 = vrot.slane %v3436_v20, 1 }
  0x4e   : > { %2329 = vmatpush1.bf16.msra.mxu1 %v2328_v26  ;;  %v3303_v26 = vsel %vm314_vm0, %v325_v15, %v326_v16  ;;  %v685_v15 = vld [vmem:[%s4719_s1 + $0x378] sm:$0xff] }
  0x4f   : > { %2377 = vmatpush1.bf16.msra.mxu0 %v2376_v27  ;;  %2330 = vmatprep.subr.bf16.mxu1 %v4723_v3  ;;  %v3306_v27 = vld [vmem:[%s3033_s5 + $0x48] sm:$0xff] }
  0x50   : > { %2378 = vmatprep.subr.bf16.mxu0 %v4723_v3 }
  0x52   : > { %2332 = vmatpush1.bf16.msra.mxu1 %v2331_v32  ;;  %v647_v32 = vld [vmem:[%s4719_s1 + $0x248] sm:$0xff] }
  0x53   : > { %2380 = vmatpush1.bf16.msra.mxu0 %v2379_v33  ;;  %2333 = vmatprep.subr.bf16.mxu1 %v4723_v3  ;;  %v3319_v33 = vpack.c.bf16 %v677_v23, %v676_v22  ;;  %v2397_v43 = vpack.c.bf16 %v647_v32, %v646_v31  ;;  %v338_v22 = vrot.slane %v226_v8, 1  ;;  %v2406_v23 = vpack.c.bf16 %v653_v11, %v652_v9  ;;  %v687_v31 = vld [vmem:[%s4719_s1 + $0x388] sm:$0xff] }
  0x54   : > { %2381 = vmatprep.subr.bf16.mxu0 %v4723_v3 }
  0x56   : > { %2335 = vmatpush1.bf16.msra.mxu1 %v2334_v39  ;;  %v330_v39 = vrot.slane %v3306_v27, 1 }
  0x57   : > { %2383 = vmatpush1.bf16.msra.mxu0 %v2382_v40  ;;  %2512 = vmatprep.subr.bf16.mxu1 %v4723_v3  ;;  %v331_v40 = vrot.slane %v3309_v30, 1 }
  0x58   : > { %2384 = vmatprep.subr.bf16.mxu0 %v4723_v3 }
  0x59   : > { %783 = vmatmul.mubr.f32.vlgmr.msra.gmra.mrb[0].mxu1 %v3050_v41  ;;  %v3239_v41 = vsel %vm314_vm0, %v320_v54, %v321_v58  ;;  %v3367_v54 = vsel %vm314_vm0, %v330_v39, %v331_v40 }
  0x5a   : > { %1008 = vmatmul.mubr.f32.vlgmr.msra.gmra.mrb[0].mxu0 %v430_v55  ;;  %787 = vmatprep.mubr.f32.mxu1 %v319_v56  ;;  %v3370_v55 = vld [vmem:[%s3033_s5 + $0x60] sm:$0xff]  ;;  %v444_v56 = vrot.slane %v3309_v30, 2 }
  0x5b   : > { %2386 = vmatpush1.bf16.msra.mxu0 %v2385_v53  ;;  %1012 = vmatprep.mubr.f32.mxu0 %v3202_v50  ;;  %v443_v53 = vrot.slane %v3306_v27, 2  ;;  %v448_v16 = vrot.slane %v3370_v55, 2 }
  0x5c   : > { %2387 = vmatprep.subr.bf16.mxu0 %v4723_v3  ;;  %2528 = vmatpush1.bf16.msra.mxu1 %v3225_v62 }
  0x5d   : > { %788 = vmatmul.mubr.f32.gmra.mrb[2].mxu1 %v3053_v42  ;;  %2513 = vmatprep.subr.bf16.mxu1 %v4723_v3  ;;  %v3271_v42 = vsel %vm314_vm0, %v321_v58, %v323_v6  ;;  %v2400_v58 = vpack.c.bf16 %v649_v48, %v648_v47  ;;  %v336_v6 = vrot.slane %v3374_v59, 1  ;;  %v688_v48 = vld [vmem:[%s4719_s1 + $0x390] sm:$0xff] }
  0x5e   : > { %1013 = vmatmul.mubr.f32.gmra.mrb[2].mxu0 %v432_v2  ;;  %792 = vmatprep.mubr.f32.mxu1 %v3239_v41  ;;  %v335_v2 = vrot.slane %v3370_v55, 1 }
  0x5f   : > { %1017 = vmatprep.mubr.f32.mxu0 %v3242_v4  ;;  %2389 = vmatpush1.bf16.msra.mxu0 %v2388_v5  ;;  %v3402_v5 = vsel %vm314_vm0, %v331_v40, %v333_v57  ;;  %v229_v40 = vld [vmem:[%s3033_s5 + $0x88] sm:$0x3]  ;;  %v3501_v57 = vld [vmem:[%s3033_s5 + $0x90] sm:$0xff] }
  0x60   : > { %2390 = vmatprep.subr.bf16.mxu0 %v4723_v3  ;;  %2529 = vmatpush1.bf16.msra.mxu1 %v3255_v10  ;;  %v3433_v19 = vsel %vm314_vm0, %v335_v2, %v336_v6  ;;  %v690_v2 = vld [vmem:[%s4719_s1 + $0x3a0] sm:$0xff]  ;;  %v456_v8 = vrot.slane %v229_v40, 2  ;;  %v345_v9 = vrot.slane %v3501_v57, 1 }
  0x61   : > { %793 = vmatmul.mubr.f32.gmra.mrb[4].mxu1 %v3058_v45  ;;  %2514 = vmatprep.subr.bf16.mxu1 %v4723_v3  ;;  %v3300_v45 = vsel %vm427_vm1, %v434_v1, %v436_v14  ;;  %v446_v1 = vrot.slane %v223_v46, 2  ;;  %v684_v14 = vld [vmem:[%s4719_s1 + $0x370] sm:$0xff]  ;;  %v657_v46 = vld [vmem:[%s4719_s1 + $0x298] sm:$0xff] }
  0x62   : > { %1018 = vmatmul.mubr.f32.gmra.mrb[4].mxu0 %v3267_v13  ;;  %797 = vmatprep.mubr.f32.mxu1 %v3271_v42  ;;  %v3449_v28 = vpack.c.bf16 %v685_v15, %v684_v14  ;;  %v2415_v14 = vpack.c.bf16 %v659_v0, %v658_v63  ;;  %v232_v15 = vld [vmem:[%s3033_s5 + $0xa0] sm:$0x3]  ;;  %v235_v0 = vld [vmem:[%s3033_s5 + $0xb8] sm:$0x3] }
  0x63   : > { %1022 = vmatprep.mubr.f32.mxu0 %v3246_v7  ;;  %2392 = vmatpush1.bf16.msra.mxu0 %v2391_v17  ;;  %v449_v17 = vrot.slane %v3374_v59, 2  ;;  %v3430_v18 = vsel %vm427_vm1, %v444_v56, %v446_v1 }
  0x64   : > { %2393 = vmatprep.subr.bf16.mxu0 %v4723_v3  ;;  %2530 = vmatpush1.bf16.msra.mxu1 %v3284_v21 }
  0x65   : > { %798 = vmatmul.mubr.f32.gmra.mrb[6].mxu1 %v3202_v50  ;;  %2515 = vmatprep.subr.bf16.mxu1 %v4723_v3  ;;  %v680_v50 = vld [vmem:[%s4719_s1 + $0x350] sm:$0xff]  ;;  %v3462_v32 = vsel %vm427_vm1, %v448_v16, %v449_v17 }
  0x66   : > { %1023 = vmatmul.mubr.f32.gmra.mrb[6].mxu0 %v3300_v45  ;;  %802 = vmatprep.mubr.f32.mxu1 %v3303_v26  ;;  %v3384_v44 = vpack.c.bf16 %v681_v51, %v680_v50  ;;  %v689_v50 = vld [vmem:[%s4719_s1 + $0x398] sm:$0xff]  ;;  %v453_v51 = vrot.slane %v3436_v20, 2  ;;  %v660_v16 = vld [vmem:[%s4719_s1 + $0x2b0] sm:$0xff] }
  0x67   : > { %1027 = vmatprep.mubr.f32.mxu0 %v3306_v27  ;;  %2395 = vmatpush1.bf16.msra.mxu0 %v2394_v29  ;;  %v686_v29 = vld [vmem:[%s4719_s1 + $0x380] sm:$0xff]  ;;  %v3514_v1 = vpack.c.bf16 %v689_v50, %v688_v48  ;;  %v695_v50 = vld [vmem:[%s4719_s1 + $0x3c8] sm:$0xff] }
  0x68   : > { %2396 = vmatprep.subr.bf16.mxu0 %v4723_v3  ;;  %2531 = vmatpush1.bf16.msra.mxu1 %v3319_v33  ;;  %v3479_v47 = vpack.c.bf16 %v687_v31, %v686_v29  ;;  %v694_v48 = vld [vmem:[%s4719_s1 + $0x3c0] sm:$0xff] }
  0x69   : > { %803 = vmatmul.mubr.f32.gmra.mrb[8].mxu1 %v3242_v4  ;;  %2516 = vmatprep.subr.bf16.mxu1 %v4723_v3  ;;  %v3399_v4 = vsel %vm427_vm1, %v443_v53, %v444_v56  ;;  %v454_v53 = vrot.slane %v3439_v24, 2  ;;  %v3498_v56 = vsel %vm314_vm0, %v340_v35, %v341_v37  ;;  %4798 = vst [vmem:[#allocation10_spill] sm:$0xff] %v3514_v1  ;;  %v348_v35 = vrot.slane %v232_v15, 1 }
  0x6a   : > { %1028 = vmatmul.mubr.f32.gmra.mrb[8].mxu0 %v3332_v36  ;;  %807 = vmatprep.mubr.f32.mxu1 %v3336_v38  ;;  %4797 = vst [vmem:[#allocation9_spill] sm:$0xff] %v3479_v47 }
  0x6b   : > { %1032 = vmatprep.mubr.f32.mxu0 %v3309_v30  ;;  %2398 = vmatpush1.bf16.msra.mxu0 %v2397_v43  ;;  %v656_v43 = vld [vmem:[%s4719_s1 + $0x290] sm:$0xff] }
  0x6c   : > { %2399 = vmatprep.subr.bf16.mxu0 %v4723_v3  ;;  %2532 = vmatpush1.bf16.msra.mxu1 %v3349_v49 }
  0x6d   : > { %808 = vmatmul.mubr.f32.gmra.mrb[10].mxu1 %v3246_v7  ;;  %2517 = vmatprep.subr.bf16.mxu1 %v4723_v3  ;;  %v2403_v7 = vpack.c.bf16 %v651_v61, %v650_v60  ;;  %v2412_v60 = vpack.c.bf16 %v657_v46, %v656_v43  ;;  %v3504_v61 = vld [vmem:[%s3033_s5 + $0x98] sm:$0xff]  ;;  %v663_v43 = vld [vmem:[%s4719_s1 + $0x2c8] sm:$0xff] }
  0x6e   : > { %1033 = vmatmul.mubr.f32.gmra.mrb[10].mxu0 %v3362_v52  ;;  %812 = vmatprep.mubr.f32.mxu1 %v3367_v54  ;;  %v346_v11 = vrot.slane %v3504_v61, 1  ;;  %v459_v29 = vrot.slane %v3504_v61, 2 }
  0x6f   : > { %1037 = vmatprep.mubr.f32.mxu0 %v3370_v55  ;;  %2401 = vmatpush1.bf16.msra.mxu0 %v2400_v58  ;;  %v343_v58 = vrot.slane %v229_v40, 1  ;;  %v662_v40 = vld [vmem:[%s4719_s1 + $0x2c0] sm:$0xff] }
  0x70   : > { %2402 = vmatprep.subr.bf16.mxu0 %v4723_v3  ;;  %2533 = vmatpush1.bf16.msra.mxu1 %v3384_v44  ;;  %v3563_v31 = vsel %vm314_vm0, %v345_v9, %v346_v11  ;;  %v2421_v63 = vpack.c.bf16 %v663_v43, %v662_v40  ;;  %v696_v9 = vld [vmem:[%s4719_s1 + $0x3d0] sm:$0xff]  ;;  %v698_v43 = vld [vmem:[%s4719_s1 + $0x3e0] sm:$0xff] }
  0x71   : > { %813 = vmatmul.mubr.f32.gmra.mrb[12].mxu1 %v3306_v27  ;;  %2518 = vmatprep.subr.bf16.mxu1 %v4723_v3  ;;  %v655_v27 = vld [vmem:[%s4719_s1 + $0x288] sm:$0xff] }
  0x72   : > { %1038 = vmatmul.mubr.f32.gmra.mrb[12].mxu0 %v3399_v4  ;;  %817 = vmatprep.mubr.f32.mxu1 %v3402_v5  ;;  %v2409_v39 = vpack.c.bf16 %v655_v27, %v654_v25  ;;  %v693_v25 = vld [vmem:[%s4719_s1 + $0x3b8] sm:$0xff]  ;;  %v458_v27 = vrot.slane %v3501_v57, 2 }
  0x73   : > { %1042 = vmatprep.mubr.f32.mxu0 %v3374_v59  ;;  %2404 = vmatpush1.bf16.msra.mxu0 %v2403_v7  ;;  %v3527_v7 = vsel %vm427_vm1, %v453_v51, %v454_v53 }
  0x74   : > { %2405 = vmatprep.subr.bf16.mxu0 %v4723_v3  ;;  %2534 = vmatpush1.bf16.msra.mxu1 %v3414_v12  ;;  %v3592_v51 = vsel %vm427_vm1, %v458_v27, %v459_v29 }
  0x75   : > { %818 = vmatmul.mubr.f32.gmra.mrb[14].mxu1 %v3309_v30  ;;  %2519 = vmatprep.subr.bf16.mxu1 %v4723_v3  ;;  %v3466_v30 = vsel %vm314_vm0, %v336_v6, %v338_v22  ;;  %v691_v6 = vld [vmem:[%s4719_s1 + $0x3a8] sm:$0xff]  ;;  %4803 = vst [vmem:[#allocation15_spill] sm:$0xff] %v3592_v51 }
  0x76   : > { %1043 = vmatmul.mubr.f32.gmra.mrb[14].mxu0 %v3430_v18  ;;  %822 = vmatprep.mubr.f32.mxu1 %v3433_v19  ;;  %v3544_v22 = vpack.c.bf16 %v691_v6, %v690_v2  ;;  %v664_v2 = vld [vmem:[%s4719_s1 + $0x2d0] sm:$0xff]  ;;  %v665_v6 = vld [vmem:[%s4719_s1 + $0x2d8] sm:$0xff] }
  0x77   : > { %1047 = vmatprep.mubr.f32.mxu0 %v3436_v20  ;;  %2407 = vmatpush1.bf16.msra.mxu0 %v2406_v23  ;;  %v692_v23 = vld [vmem:[%s4719_s1 + $0x3b0] sm:$0xff]  ;;  %v2424_v27 = vpack.c.bf16 %v665_v6, %v664_v2 }
  0x78   : > { %2408 = vmatprep.subr.bf16.mxu0 %v4723_v3  ;;  %2535 = vmatpush1.bf16.msra.mxu1 %v3449_v28  ;;  %4800 = vst [vmem:[#allocation12_spill] sm:$0xff] %v3544_v22  ;;  %v3579_v46 = vpack.c.bf16 %v693_v25, %v692_v23  ;;  %v3631_v23 = vld [vmem:[%s3033_s5 + $0xc0] sm:$0xff]  ;;  %v353_v25 = vrot.slane %v235_v0, 1 }
  0x79   : > { %823 = vmatmul.mubr.f32.gmra.mrb[16].mxu1 %v3370_v55  ;;  %2520 = vmatprep.subr.bf16.mxu1 %v4723_v3  ;;  %v3495_v55 = vsel %vm427_vm1, %v449_v17, %v451_v34  ;;  %v661_v17 = vld [vmem:[%s4719_s1 + $0x2b8] sm:$0xff]  ;;  %v3566_v34 = vld [vmem:[%s3033_s5 + $0xa8] sm:$0xff] }
  0x7a   : > { %1048 = vmatmul.mubr.f32.gmra.mrb[16].mxu0 %v3462_v32  ;;  %827 = vmatprep.mubr.f32.mxu1 %v3466_v30  ;;  %4802 = vst [vmem:[#allocation14_spill] sm:$0xff] %v3579_v46 }
  0x7b   : > { %1052 = vmatprep.mubr.f32.mxu0 %v3439_v24  ;;  %2410 = vmatpush1.bf16.msra.mxu0 %v2409_v39  ;;  %v3569_v39 = vld [vmem:[%s3033_s5 + $0xb0] sm:$0xff] }
  0x7c   : > { %2411 = vmatprep.subr.bf16.mxu0 %v4723_v3  ;;  %2536 = vmatpush1.bf16.msra.mxu1 %v3479_v47  ;;  %v3808_v47 = vld [vmem:[%s3033_s5 + $0x128] sm:$0xff] }
  0x7d   : > { %828 = vmatmul.mubr.f32.gmra.mrb[18].mxu1 %v3374_v59  ;;  %2521 = vmatprep.subr.bf16.mxu1 %v4723_v3  ;;  %v3531_v59 = vsel %vm314_vm0, %v341_v37, %v343_v58  ;;  %v2418_v37 = vpack.c.bf16 %v661_v17, %v660_v16  ;;  %v350_v58 = vrot.slane %v3566_v34, 1  ;;  %4824 = vst [vmem:[#allocation35_spill] sm:$0xff] %v3808_v47 }
  0x7e   : > { %1053 = vmatmul.mubr.f32.gmra.mrb[18].mxu0 %v3495_v55  ;;  %832 = vmatprep.mubr.f32.mxu1 %v3498_v56  ;;  %4799 = vst [vmem:[#allocation11_spill] sm:$0xff] %v3531_v59 }
  0x7f   : > { %1057 = vmatprep.mubr.f32.mxu0 %v3501_v57  ;;  %2413 = vmatpush1.bf16.msra.mxu0 %v2412_v60  ;;  %v351_v60 = vrot.slane %v3569_v39, 1 }
  0x80   : > { %2414 = vmatprep.subr.bf16.mxu0 %v4723_v3  ;;  %2537 = vmatpush1.bf16.msra.mxu1 %v3514_v1 }
  0x81   : > { %833 = vmatmul.mubr.f32.gmra.mrb[20].mxu1 %v3436_v20  ;;  %2522 = vmatprep.subr.bf16.mxu1 %v4723_v3  ;;  %v3560_v20 = vsel %vm427_vm1, %v454_v53, %v456_v8  ;;  %v461_v53 = vrot.slane %v232_v15, 2  ;;  %v3609_v8 = vpack.c.bf16 %v695_v50, %v694_v48  ;;  %v464_v15 = vrot.slane %v3569_v39, 2  ;;  %v699_v48 = vld [vmem:[%s4719_s1 + $0x3e8] sm:$0xff] }
  0x82   : > { %1058 = vmatmul.mubr.f32.gmra.mrb[20].mxu0 %v3527_v7  ;;  %837 = vmatprep.mubr.f32.mxu1 %v3531_v59  ;;  %4801 = vst [vmem:[#allocation13_spill] sm:$0xff] %v3560_v20  ;;  %v3628_v17 = vsel %vm314_vm0, %v350_v58, %v351_v60  ;;  %v3661_v58 = vsel %vm314_vm0, %v351_v60, %v353_v25  ;;  %v669_v60 = vld [vmem:[%s4719_s1 + $0x2f8] sm:$0xff]  ;;  %v3805_v59 = vld [vmem:[%s3033_s5 + $0x120] sm:$0xff] }
  0x83   : > { %1062 = vmatprep.mubr.f32.mxu0 %v3504_v61  ;;  %2416 = vmatpush1.bf16.msra.mxu0 %v2415_v14  ;;  %4804 = vst [vmem:[#allocation16_spill] sm:$0xff] %v3609_v8  ;;  %v463_v14 = vrot.slane %v3566_v34, 2  ;;  %v3625_v16 = vsel %vm427_vm1, %v459_v29, %v461_v53  ;;  %v667_v29 = vld [vmem:[%s4719_s1 + $0x2e8] sm:$0xff]  ;;  %v466_v53 = vrot.slane %v235_v0, 2  ;;  %v668_v0 = vld [vmem:[%s4719_s1 + $0x2f0] sm:$0xff]  ;;  %v701_v25 = vld [vmem:[%s4719_s1 + $0x3f8] sm:$0xff] }
  0x84   : > { %2417 = vmatprep.subr.bf16.mxu0 %v4723_v3  ;;  %2538 = vmatpush1.bf16.msra.mxu1 %v3544_v22  ;;  %4805 = vst [vmem:[#allocation17_spill] sm:$0xff] %v3625_v16  ;;  %v4810_v22 = vmov 0.0|0.0   ;;  %4823 = vst [vmem:[#allocation34_spill] sm:$0xff] %v3805_v59 }
  0x85   : > { %838 = vmatmul.mubr.f32.gmra.mrb[22].mxu1 %v3439_v24  ;;  %2523 = vmatprep.subr.bf16.mxu1 %v4723_v3  ;;  %v3596_v24 = vsel %vm314_vm0, %v346_v11, %v348_v35  ;;  %v697_v11 = vld [vmem:[%s4719_s1 + $0x3d8] sm:$0xff]  ;;  %v3634_v35 = vld [vmem:[%s3033_s5 + $0xc8] sm:$0xff]  ;;  %v3657_v50 = vsel %vm427_vm1, %v463_v14, %v464_v15  ;;  %v700_v14 = vld [vmem:[%s4719_s1 + $0x3f0] sm:$0xff] }
  0x86   : > { %1063 = vmatmul.mubr.f32.gmra.mrb[22].mxu0 %v3560_v20  ;;  %842 = vmatprep.mubr.f32.mxu1 %v3563_v31  ;;  %v3644_v40 = vpack.c.bf16 %v697_v11, %v696_v9  ;;  %4807 = vst [vmem:[#allocation19_spill] sm:$0xff] %v3657_v50  ;;  %v356_v2 = vrot.slane %v3634_v35, 1  ;;  %v238_v9 = vld [vmem:[%s3033_s5 + $0xd0] sm:$0x3]  ;;  %v3674_v11 = vpack.c.bf16 %v699_v48, %v698_v43  ;;  %v703_v43 = vld [vmem:[%s4719_s1 + $0x408] sm:$0xff]  ;;  %v376_v20 = vrot.slane %v3808_v47, 1 }
  0x87   : > { %1067 = vmatprep.mubr.f32.mxu0 %v3566_v34  ;;  %2419 = vmatpush1.bf16.msra.mxu0 %v2418_v37  ;;  %v666_v37 = vld [vmem:[%s4719_s1 + $0x2e0] sm:$0xff]  ;;  %v3696_v48 = vsel %vm427_vm1, %v464_v15, %v466_v53 }
  0x88   : > { %2420 = vmatprep.subr.bf16.mxu0 %v4723_v3  ;;  %2539 = vmatpush1.bf16.msra.mxu1 %v3579_v46  ;;  %4806 = vst [vmem:[#allocation18_spill] sm:$0xff] %v3644_v40  ;;  %v2427_v6 = vpack.c.bf16 %v667_v29, %v666_v37  ;;  %4808 = vst [vmem:[#allocation20_spill] sm:$0xff] %v3674_v11  ;;  %v469_v37 = vrot.slane %v3634_v35, 2  ;;  %v702_v29 = vld [vmem:[%s4719_s1 + $0x400] sm:$0xff]  ;;  %v3702_v46 = vld [vmem:[%s3033_s5 + $0xd8] sm:$0xff] }
  0x89   : > { %843 = vmatmul.mubr.f32.gmra.mrb[24].mxu1 %v3501_v57  ;;  %2524 = vmatprep.subr.bf16.mxu1 %v4723_v3  ;;  %4809 = vst [vmem:[#allocation21_spill] sm:$0xff] %v3696_v48  ;;  %v3713_v15 = vpack.c.bf16 %v703_v43, %v702_v29  ;;  %v3746_v29 = vld [vmem:[%s3033_s5 + $0xf8] sm:$0xff] }
  0x8a   : > { %1068 = vmatmul.mubr.f32.gmra.mrb[24].mxu0 %v3592_v51  ;;  %847 = vmatprep.mubr.f32.mxu1 %v3596_v24  ;;  %4814 = vst [vmem:[#allocation25_spill] sm:$0xff] %v3746_v29  ;;  %v247_v51 = vld [vmem:[%s3033_s5 + $0x118] sm:$0x3] }
  0x8b   : > { %1072 = vmatprep.mubr.f32.mxu0 %v3569_v39  ;;  %2422 = vmatpush1.bf16.msra.mxu0 %v2421_v63  ;;  %v355_v63 = vrot.slane %v3631_v23, 1 }
  0x8c   : > { %2423 = vmatprep.subr.bf16.mxu0 %v4723_v3  ;;  %2540 = vmatpush1.bf16.msra.mxu1 %v3609_v8  ;;  %v2430_v8 = vpack.c.bf16 %v669_v60, %v668_v0  ;;  %v360_v0 = vrot.slane %v3702_v46, 1 }
  0x8d   : > { %848 = vmatmul.mubr.f32.gmra.mrb[26].mxu1 %v3504_v61  ;;  %2525 = vmatprep.subr.bf16.mxu1 %v4723_v3 }
  0x8e   : > { %1073 = vmatmul.mubr.f32.gmra.mrb[26].mxu0 %v3625_v16  ;;  %852 = vmatprep.mubr.f32.mxu1 %v3628_v17  ;;  %v3709_v16 = vpack.c.bf16 %v701_v25, %v700_v14  ;;  %v241_v14 = vld [vmem:[%s3033_s5 + $0xe8] sm:$0x3] }
  0x8f   : > { %1077 = vmatprep.mubr.f32.mxu0 %v3631_v23  ;;  %2425 = vmatpush1.bf16.msra.mxu0 %v2424_v27  ;;  %v468_v27 = vrot.slane %v3631_v23, 2  ;;  %v363_v25 = vrot.slane %v241_v14, 1 }
  0x90   : > { %2426 = vmatprep.subr.bf16.mxu0 %v4723_v3  ;;  %2541 = vmatpush1.bf16.msra.mxu1 %v3644_v40  ;;  %v358_v40 = vrot.slane %v238_v9, 1  ;;  %4811 = vst [vmem:[#allocation22_spill] sm:$0xff] %v3709_v16 }
  0x91   : > { %853 = vmatmul.mubr.f32.gmra.mrb[28].mxu1 %v3566_v34  ;;  %2526 = vmatprep.subr.bf16.mxu1 %v4723_v3  ;;  %v3699_v3 = vsel %vm314_vm0, %v355_v63, %v356_v2  ;;  %v3718_v53 = vsel %vm427_vm1, %v468_v27, %v469_v37  ;;  %v3743_v27 = vld [vmem:[%s3033_s5 + $0xf0] sm:$0xff] }
  0x92   : > { %1078 = vmatmul.mubr.f32.gmra.mrb[28].mxu0 %v3657_v50  ;;  %857 = vmatprep.mubr.f32.mxu1 %v3661_v58  ;;  %v3705_v50 = vld [vmem:[%s3033_s5 + $0xe0] sm:$0xff]  ;;  %4812 = vst [vmem:[#allocation23_spill] sm:$0xff] %v3718_v53  ;;  %v3722_v63 = vsel %vm314_vm0, %v356_v2, %v358_v40  ;;  %v473_v40 = vrot.slane %v3702_v46, 2 }
  0x93   : > { %1082 = vmatprep.mubr.f32.mxu0 %v3634_v35  ;;  %2428 = vmatpush1.bf16.msra.mxu0 %v2427_v6  ;;  %v471_v6 = vrot.slane %v238_v9, 2  ;;  %v361_v60 = vrot.slane %v3705_v50, 1  ;;  %v474_v2 = vrot.slane %v3705_v50, 2 }
  0x94   : > { %2429 = vmatprep.subr.bf16.mxu0 %v4810_v22  ;;  %2542 = vmatpush1.bf16.msra.mxu1 %v3674_v11  ;;  %v244_v11 = vld [vmem:[%s3033_s5 + $0x100] sm:$0x3] }
  0x95   : > { %858 = vmatmul.mubr.f32.gmra.mrb[30].mxu1 %v3569_v39  ;;  %2527 = vmatprep.subr.bf16.mxu1 %v4810_v22  ;;  %v3740_v9 = vsel %vm314_vm0, %v360_v0, %v361_v60  ;;  %v3752_v43 = vsel %vm427_vm1, %v473_v40, %v474_v2  ;;  %v365_v0 = vrot.slane %v3743_v27, 1  ;;  %v478_v40 = vrot.slane %v3743_v27, 2 }
  0x96   : > { %1083 = vmatmul.mubr.f32.gmra.mrb[30].mxu0 %v3696_v48  ;;  %862 = vmatprep.mubr.f32.mxu1 %v3699_v3  ;;  %4815 = vst [vmem:[#allocation26_spill] sm:$0xff] %v3752_v43  ;;  %v3777_v48 = vld [vmem:[%s3033_s5 + $0x110] sm:$0xff] }
  0x97   : > { %1087 = vmatprep.mubr.f32.mxu0 %v3702_v46  ;;  %2431 = vmatpush1.bf16.msra.mxu0 %v2430_v8  ;;  %v3737_v8 = vsel %vm427_vm1, %v469_v37, %v471_v6  ;;  %v3756_v37 = vsel %vm314_vm0, %v361_v60, %v363_v25  ;;  %v476_v6 = vrot.slane %v241_v14, 2  ;;  %v368_v25 = vrot.slane %v244_v11, 1  ;;  %4818 = vst [vmem:[#allocation29_spill] sm:$0xff] %v3777_v48 }
  0x98   : > { %2543 = vmatpush1.bf16.msra.mxu1 %v3709_v16  ;;  %2432 = vmatprep.subr.bf16.mxu0 %v4810_v22  ;;  %4813 = vst [vmem:[#allocation24_spill] sm:$0xff] %v3737_v8  ;;  %v366_v16 = vrot.slane %v3746_v29, 1  ;;  %v371_v1 = vrot.slane %v3777_v48, 1 }
  0x99   : > { %863 = vmatmul.mubr.f32.gmra.mrb[32].mxu1 %v3631_v23  ;;  %2481 = vmatprep.subr.bf16.mxu1 %v3713_v15  ;;  %v3768_v60 = vsel %vm427_vm1, %v474_v2, %v476_v6  ;;  %v481_v6 = vrot.slane %v244_v11, 2 }
  0x9a   : > { %1088 = vmatmul.mubr.f32.gmra.mrb[32].mxu0 %v3718_v53  ;;  %867 = vmatprep.mubr.f32.mxu1 %v3722_v63  ;;  %4816 = vst [vmem:[#allocation27_spill] sm:$0xff] %v3768_v60  ;;  %v3771_v14 = vsel %vm314_vm0, %v365_v0, %v366_v16  ;;  %v3774_v53 = vld [vmem:[%s3033_s5 + $0x108] sm:$0xff]  ;;  %v3787_v2 = vsel %vm314_vm0, %v366_v16, %v368_v25  ;;  %v373_v25 = vrot.slane %v247_v51, 1 }
  0x9b   : > { %1092 = vmatprep.mubr.f32.mxu0 %v3705_v50  ;;  %4817 = vst [vmem:[#allocation28_spill] sm:$0xff] %v3774_v53  ;;  %4820 = vst [vmem:[#allocation31_spill] sm:$0xff] %v3787_v2  ;;  %v370_v0 = vrot.slane %v3774_v53, 1 }
  0x9d   : > { %868 = vmatmul.mubr.f32.gmra.mrb[34].mxu1 %v3634_v35  ;;  %v3802_v11 = vsel %vm314_vm0, %v370_v0, %v371_v1  ;;  %v375_v0 = vrot.slane %v3805_v59, 1 }
  0x9e   : > { %1093 = vmatmul.mubr.f32.gmra.mrb[34].mxu0 %v3737_v8  ;;  %872 = vmatprep.mubr.f32.mxu1 %v3740_v9  ;;  %v479_v8 = vrot.slane %v3746_v29, 2  ;;  %4822 = vst [vmem:[#allocation33_spill] sm:$0xff] %v3802_v11 }
  0x9f   : > { %1097 = vmatprep.mubr.f32.mxu0 %v3743_v27 }
  0xa0   : > { %v3799_v16 = vsel %vm427_vm1, %v479_v8, %v481_v6  ;;  %v486_v6 = vrot.slane %v247_v51, 2  ;;  %v3832_v51 = vsel %vm314_vm0, %v375_v0, %v376_v20 }
  0xa1   : > { %873 = vmatmul.mubr.f32.gmra.mrb[36].mxu1 %v3702_v46  ;;  %4821 = vst [vmem:[#allocation32_spill] sm:$0xff] %v3799_v16  ;;  %4828 = vst [vmem:[#allocation39_spill] sm:$0xff] %v3832_v51 }
  0xa2   : > { %1098 = vmatmul.mubr.f32.gmra.mrb[36].mxu0 %v3752_v43  ;;  %877 = vmatprep.mubr.f32.mxu1 %v3756_v37  ;;  %v3783_v43 = vsel %vm427_vm1, %v478_v40, %v479_v8  ;;  %v483_v40 = vrot.slane %v3774_v53, 2  ;;  %v3818_v8 = vsel %vm314_vm0, %v371_v1, %v373_v25  ;;  %v489_v25 = vrot.slane %v3808_v47, 2 }
  0xa3   : > { %1102 = vmatprep.mubr.f32.mxu0 %v3746_v29  ;;  %4819 = vst [vmem:[#allocation30_spill] sm:$0xff] %v3783_v43  ;;  %4826 = vst [vmem:[#allocation37_spill] sm:$0xff] %v3818_v8 }
  0xa5   : > { %878 = vmatmul.mubr.f32.gmra.mrb[38].mxu1 %v3705_v50 }
  0xa6   : > { %1103 = vmatmul.mubr.f32.gmra.mrb[38].mxu0 %v3768_v60  ;;  %882 = vmatprep.mubr.f32.mxu1 %v3771_v14  ;;  %v484_v60 = vrot.slane %v3777_v48, 2 }
  0xa7   : > { %1107 = vmatprep.mubr.f32.mxu0 %v3774_v53 }
  0xa8   : > { %v3829_v1 = vsel %vm427_vm1, %v484_v60, %v486_v6 }
  0xa9   : > { %883 = vmatmul.mubr.f32.gmra.mrb[40].mxu1 %v3743_v27  ;;  %4827 = vst [vmem:[#allocation38_spill] sm:$0xff] %v3829_v1 }
  0xaa   : > { %1108 = vmatmul.mubr.f32.gmra.mrb[40].mxu0 %v3783_v43  ;;  %887 = vmatprep.mubr.f32.mxu1 %v3787_v2  ;;  %v3814_v43 = vsel %vm427_vm1, %v483_v40, %v484_v60  ;;  %v488_v40 = vrot.slane %v3805_v59, 2  ;;  %v259_v2 = vld [vmem:[%s3033_s5 + $0x178] sm:$0x3] }
  0xab   : > { %1112 = vmatprep.mubr.f32.mxu0 %v3777_v48  ;;  %4825 = vst [vmem:[#allocation36_spill] sm:$0xff] %v3814_v43 }
  0xac   : > { %v3846_v60 = vsel %vm427_vm1, %v488_v40, %v489_v25 }
  0xad   : > { %888 = vmatmul.mubr.f32.gmra.mrb[42].mxu1 %v3746_v29  ;;  %v250_v29 = vld [vmem:[%s3033_s5 + $0x130] sm:$0x3]  ;;  %4830 = vst [vmem:[#allocation41_spill] sm:$0xff] %v3846_v60 }
  0xae   : > { %1113 = vmatmul.mubr.f32.gmra.mrb[42].mxu0 %v3799_v16  ;;  %892 = vmatprep.mubr.f32.mxu1 %v3802_v11  ;;  %v378_v16 = vrot.slane %v250_v29, 1  ;;  %v3836_v11 = vld [vmem:[%s3033_s5 + $0x138] sm:$0xff] }
  0xaf   : > { %1117 = vmatprep.mubr.f32.mxu0 %v3805_v59  ;;  %4829 = vst [vmem:[#allocation40_spill] sm:$0xff] %v3836_v11  ;;  %v380_v0 = vrot.slane %v3836_v11, 1 }
  0xb0   : > { %v3849_v6 = vsel %vm314_vm0, %v376_v20, %v378_v16 }
  0xb1   : > { %893 = vmatmul.mubr.f32.gmra.mrb[44].mxu1 %v3774_v53  ;;  %v3839_v53 = vld [vmem:[%s3033_s5 + $0x140] sm:$0xff]  ;;  %4831 = vst [vmem:[#allocation42_spill] sm:$0xff] %v3849_v6 }
  0xb2   : > { %1118 = vmatmul.mubr.f32.gmra.mrb[44].mxu0 %v3814_v43  ;;  %897 = vmatprep.mubr.f32.mxu1 %v3818_v8  ;;  %v491_v43 = vrot.slane %v250_v29, 2  ;;  %v381_v8 = vrot.slane %v3839_v53, 1  ;;  %v493_v29 = vrot.slane %v3836_v11, 2  ;;  %v494_v16 = vrot.slane %v3839_v53, 2 }
  0xb3   : > { %1122 = vmatprep.mubr.f32.mxu0 %v3808_v47 }
  0xb4   : > { %v3860_v40 = vsel %vm427_vm1, %v489_v25, %v491_v43  ;;  %v3863_v20 = vsel %vm314_vm0, %v380_v0, %v381_v8  ;;  %v3877_v43 = vsel %vm427_vm1, %v493_v29, %v494_v16 }
  0xb5   : > { %898 = vmatmul.mubr.f32.gmra.mrb[46].mxu1 %v3777_v48  ;;  %v253_v48 = vld [vmem:[%s3033_s5 + $0x148] sm:$0x3]  ;;  %4832 = vst [vmem:[#allocation43_spill] sm:$0xff] %v3860_v40  ;;  %4833 = vst [vmem:[#allocation44_spill] sm:$0xff] %v3863_v20 }
  0xb6   : > { %1123 = vmatmul.mubr.f32.gmra.mrb[46].mxu0 %v3829_v1  ;;  %902 = vmatprep.mubr.f32.mxu1 %v3832_v51  ;;  %v383_v1 = vrot.slane %v253_v48, 1  ;;  %v3867_v51 = vld [vmem:[%s3033_s5 + $0x150] sm:$0xff]  ;;  %4834 = vst [vmem:[#allocation45_spill] sm:$0xff] %v3877_v43 }
  0xb7   : > { %1127 = vmatprep.mubr.f32.mxu0 %v3836_v11  ;;  %v385_v0 = vrot.slane %v3867_v51, 1 }
  0xb8   : > { %v3880_v25 = vsel %vm314_vm0, %v381_v8, %v383_v1 }
  0xb9   : > { %903 = vmatmul.mubr.f32.gmra.mrb[48].mxu1 %v3805_v59  ;;  %v3870_v59 = vld [vmem:[%s3033_s5 + $0x158] sm:$0xff]  ;;  %4835 = vst [vmem:[#allocation46_spill] sm:$0xff] %v3880_v25 }
  0xba   : > { %1128 = vmatmul.mubr.f32.gmra.mrb[48].mxu0 %v3846_v60  ;;  %907 = vmatprep.mubr.f32.mxu1 %v3849_v6  ;;  %v496_v60 = vrot.slane %v253_v48, 2  ;;  %v386_v6 = vrot.slane %v3870_v59, 1  ;;  %v498_v48 = vrot.slane %v3867_v51, 2 }
  0xbb   : > { %1132 = vmatprep.mubr.f32.mxu0 %v3839_v53 }
  0xbc   : > { %v3892_v8 = vsel %vm427_vm1, %v494_v16, %v496_v60  ;;  %v3895_v1 = vsel %vm314_vm0, %v385_v0, %v386_v6 }
  0xbd   : > { %908 = vmatmul.mubr.f32.gmra.mrb[50].mxu1 %v3808_v47  ;;  %v256_v47 = vld [vmem:[%s3033_s5 + $0x160] sm:$0x3]  ;;  %4836 = vst [vmem:[#allocation47_spill] sm:$0xff] %v3892_v8  ;;  %4837 = vst [vmem:[#allocation48_spill] sm:$0xff] %v3895_v1 }
  0xbe   : > { %1133 = vmatmul.mubr.f32.gmra.mrb[50].mxu0 %v3860_v40  ;;  %912 = vmatprep.mubr.f32.mxu1 %v3863_v20  ;;  %v499_v40 = vrot.slane %v3870_v59, 2  ;;  %v388_v29 = vrot.slane %v256_v47, 1  ;;  %v3898_v20 = vld [vmem:[%s3033_s5 + $0x168] sm:$0xff]  ;;  %v501_v16 = vrot.slane %v256_v47, 2 }
  0xbf   : > { %1137 = vmatprep.mubr.f32.mxu0 %v3867_v51  ;;  %v390_v0 = vrot.slane %v3898_v20, 1 }
  0xc0   : > { %v3911_v60 = vsel %vm314_vm0, %v386_v6, %v388_v29  ;;  %v3922_v6 = vsel %vm427_vm1, %v499_v40, %v501_v16  ;;  %v506_v16 = vrot.slane %v259_v2, 2 }
  0xc1   : > { %913 = vmatmul.mubr.f32.gmra.mrb[52].mxu1 %v3836_v11  ;;  %v3901_v11 = vld [vmem:[%s3033_s5 + $0x170] sm:$0xff]  ;;  %4839 = vst [vmem:[#allocation50_spill] sm:$0xff] %v3922_v6 }
  0xc2   : > { %1138 = vmatmul.mubr.f32.gmra.mrb[52].mxu0 %v3877_v43  ;;  %917 = vmatprep.mubr.f32.mxu1 %v3880_v25  ;;  %v3907_v43 = vsel %vm427_vm1, %v498_v48, %v499_v40  ;;  %v391_v25 = vrot.slane %v3901_v11, 1  ;;  %v503_v48 = vrot.slane %v3898_v20, 2  ;;  %v504_v29 = vrot.slane %v3901_v11, 2 }
  0xc3   : > { %1142 = vmatprep.mubr.f32.mxu0 %v3870_v59  ;;  %4838 = vst [vmem:[#allocation49_spill] sm:$0xff] %v3907_v43 }
  0xc4   : > { %v3925_v47 = vsel %vm314_vm0, %v390_v0, %v391_v25  ;;  %v3942_v0 = vld [vmem:[%s3033_s5 + $0x188] sm:$0xff] }
  0xc5   : > { %918 = vmatmul.mubr.f32.gmra.mrb[54].mxu1 %v3839_v53 }
  0xc6   : > { %1143 = vmatmul.mubr.f32.gmra.mrb[54].mxu0 %v3892_v8  ;;  %922 = vmatprep.mubr.f32.mxu1 %v3895_v1  ;;  %v393_v8 = vrot.slane %v259_v2, 1  ;;  %v3929_v1 = vld [vmem:[%s3033_s5 + $0x180] sm:$0xff]  ;;  %v704_v2 = vld [vmem:[%s4719_s1 + $0x410] sm:$0xff] }
  0xc7   : > { %1147 = vmatprep.mubr.f32.mxu0 %v3898_v20 }
  0xc8   : > { %v3939_v40 = vsel %vm314_vm0, %v391_v25, %v393_v8  ;;  %v705_v25 = vld [vmem:[%s4719_s1 + $0x418] sm:$0xff] }
  0xc9   : > { %923 = vmatmul.mubr.f32.gmra.mrb[56].mxu1 %v3867_v51  ;;  %v2484_v8 = vpack.c.bf16 %v705_v25, %v704_v2  ;;  %v4846_v2 = vld [vmem:[#allocation15_spill] sm:$0xff]  ;;  %v4847_v25 = vld [vmem:[#allocation10_spill] sm:$0xff] }
  0xca   : > { %1148 = vmatmul.mubr.f32.gmra.mrb[56].mxu0 %v3907_v43  ;;  %927 = vmatprep.mubr.f32.mxu1 %v3911_v60  ;;  %v3936_v43 = vsel %vm427_vm1, %v503_v48, %v504_v29  ;;  %v706_v48 = vld [vmem:[%s4719_s1 + $0x420] sm:$0xff] }
  0xcb   : > { %1152 = vmatprep.mubr.f32.mxu0 %v3901_v11 }
  0xcd   : > { %928 = vmatmul.mubr.f32.gmra.mrb[58].mxu1 %v3870_v59 }
  0xce   : > { %1153 = vmatmul.mubr.f32.gmra.mrb[58].mxu0 %v3922_v6  ;;  %932 = vmatprep.mubr.f32.mxu1 %v3925_v47  ;;  %v3949_v6 = vsel %vm427_vm1, %v504_v29, %v506_v16  ;;  %v707_v29 = vld [vmem:[%s4719_s1 + $0x428] sm:$0xff]  ;;  %v717_v16 = vld [vmem:[%s4719_s1 + $0x478] sm:$0xff] }
  0xcf   : > { %1157 = vmatprep.mubr.f32.mxu0 %v3929_v1 }
  0xd1   : > { %933 = vmatmul.mubr.f32.gmra.mrb[60].mxu1 %v3898_v20 }
  0xd2   : > { %1158 = vmatmul.mubr.f32.gmra.mrb[60].mxu0 %v3936_v43  ;;  %937 = vmatprep.mubr.f32.mxu1 %v3939_v40 }
  0xd3   : > { %1162 = vmatprep.mubr.f32.mxu0 %v3942_v0 }
  0xd5   : > { %938 = vmatmul.mubr.f32.gmra.mrb[62].mxu1 %v3901_v11 }
  0xd6   : > { %1163 = vmatmul.mubr.f32.gmra.mrb[62].mxu0 %v3949_v6  ;;  %1497 = vmatprep.mubr.f32.mxu1 %v3563_v31 }
  0xd7   : > { %1232 = vmatprep.mubr.f32.mxu0 %v3267_v13  ;;  %v708_v13 = vld [vmem:[%s4719_s1 + $0x430] sm:$0xff] }
  0xd9   : > { %1498 = vmatmul.mubr.f32.vlgmr.msra.gmra.mrb[64].mxu1 %v3501_v57  ;;  %v711_v57 = vld [vmem:[%s4719_s1 + $0x448] sm:$0xff] }
  0xda   : > { %1233 = vmatmul.mubr.f32.vlgmr.msra.gmra.mrb[0].mxu0 %v3239_v41  ;;  %1502 = vmatprep.mubr.f32.mxu1 %v3596_v24  ;;  %v2488_v41 = vpack.c.bf16 %v707_v29, %v706_v48  ;;  %v4850_v48 = vld [vmem:[#allocation17_spill] sm:$0xff]  ;;  %v4851_v29 = vld [vmem:[#allocation12_spill] sm:$0xff] }
  0xdb   : > { %2434 = vmatpush1.bf16.msra.mxu0 %v3225_v62  ;;  %1237 = vmatprep.mubr.f32.mxu0 %v3300_v45  ;;  %v709_v62 = vld [vmem:[%s4719_s1 + $0x438] sm:$0xff]  ;;  %v710_v45 = vld [vmem:[%s4719_s1 + $0x440] sm:$0xff] }
  0xdc   : > { %2435 = vmatprep.subr.bf16.mxu0 %v4810_v22  ;;  %2483 = vmatpush3.bf16.msra.mxu1 %v3713_v15  ;;  %v715_v15 = vld [vmem:[%s4719_s1 + $0x468] sm:$0xff] }
  0xdd   : > { %1503 = vmatmul.mubr.f32.gmra.mrb[66].mxu1 %v3504_v61  ;;  %2485 = vmatprep.subr.bf16.mxu1 %v2484_v8  ;;  %v712_v61 = vld [vmem:[%s4719_s1 + $0x450] sm:$0xff] }
  0xde   : > { %1238 = vmatmul.mubr.f32.gmra.mrb[2].mxu0 %v3271_v42  ;;  %1507 = vmatprep.mubr.f32.mxu1 %v3628_v17  ;;  %v2492_v42 = vpack.c.bf16 %v709_v62, %v708_v13  ;;  %v4853_v13 = vld [vmem:[#allocation39_spill] sm:$0xff] }
  0xdf   : > { %1242 = vmatprep.mubr.f32.mxu0 %v3332_v36  ;;  %2437 = vmatpush1.bf16.msra.mxu0 %v3255_v10  ;;  %v2496_v10 = vpack.c.bf16 %v711_v57, %v710_v45  ;;  %v4854_v62 = vld [vmem:[#allocation19_spill] sm:$0xff]  ;;  %v4857_v45 = vld [vmem:[#allocation42_spill] sm:$0xff]  ;;  %v4858_v57 = vld [vmem:[#allocation21_spill] sm:$0xff] }
  0xe0   : > { %2438 = vmatprep.subr.bf16.mxu0 %v4810_v22  ;;  %2487 = vmatpush3.bf16.msra.mxu1 %v2484_v8  ;;  %v4849_v8 = vld [vmem:[#allocation37_spill] sm:$0xff] }
  0xe1   : > { %1508 = vmatmul.mubr.f32.gmra.mrb[68].mxu1 %v3566_v34  ;;  %2489 = vmatprep.subr.bf16.mxu1 %v2488_v41  ;;  %v713_v34 = vld [vmem:[%s4719_s1 + $0x458] sm:$0xff] }
  0xe2   : > { %1243 = vmatmul.mubr.f32.gmra.mrb[4].mxu0 %v3303_v26  ;;  %1512 = vmatprep.mubr.f32.mxu1 %v3661_v58 }
  0xe3   : > { %1247 = vmatprep.mubr.f32.mxu0 %v3362_v52  ;;  %2440 = vmatpush1.bf16.msra.mxu0 %v3284_v21  ;;  %v2500_v21 = vpack.c.bf16 %v713_v34, %v712_v61  ;;  %v4861_v61 = vld [vmem:[#allocation44_spill] sm:$0xff]  ;;  %v4862_v34 = vld [vmem:[#allocation23_spill] sm:$0xff] }
  0xe4   : > { %2441 = vmatprep.subr.bf16.mxu0 %v4810_v22  ;;  %2491 = vmatpush3.bf16.msra.mxu1 %v2488_v41  ;;  %v4852_v41 = vld [vmem:[#allocation29_spill] sm:$0xff] }
  0xe5   : > { %1513 = vmatmul.mubr.f32.gmra.mrb[70].mxu1 %v3569_v39  ;;  %2493 = vmatprep.subr.bf16.mxu1 %v2492_v42  ;;  %v714_v39 = vld [vmem:[%s4719_s1 + $0x460] sm:$0xff] }
  0xe6   : > { %1248 = vmatmul.mubr.f32.gmra.mrb[6].mxu0 %v3336_v38  ;;  %1517 = vmatprep.mubr.f32.mxu1 %v3699_v3 }
  0xe7   : > { %1252 = vmatprep.mubr.f32.mxu0 %v3399_v4  ;;  %2443 = vmatpush1.bf16.msra.mxu0 %v3319_v33  ;;  %v2504_v33 = vpack.c.bf16 %v715_v15, %v714_v39  ;;  %v4865_v39 = vld [vmem:[#allocation46_spill] sm:$0xff]  ;;  %v4866_v15 = vld [vmem:[#allocation24_spill] sm:$0xff] }
  0xe8   : > { %2444 = vmatprep.subr.bf16.mxu0 %v4810_v22  ;;  %2495 = vmatpush3.bf16.msra.mxu1 %v2492_v42  ;;  %v4855_v42 = vld [vmem:[#allocation14_spill] sm:$0xff] }
  0xe9   : > { %1518 = vmatmul.mubr.f32.gmra.mrb[72].mxu1 %v3631_v23  ;;  %2497 = vmatprep.subr.bf16.mxu1 %v2496_v10  ;;  %v716_v23 = vld [vmem:[%s4719_s1 + $0x470] sm:$0xff] }
  0xea   : > { %1253 = vmatmul.mubr.f32.gmra.mrb[8].mxu0 %v3367_v54  ;;  %1522 = vmatprep.mubr.f32.mxu1 %v3722_v63 }
  0xeb   : > { %1257 = vmatprep.mubr.f32.mxu0 %v3430_v18  ;;  %2446 = vmatpush1.bf16.msra.mxu0 %v3349_v49  ;;  %v2508_v49 = vpack.c.bf16 %v717_v16, %v716_v23  ;;  %v4869_v23 = vld [vmem:[#allocation26_spill] sm:$0xff] }
  0xec   : > { %2447 = vmatprep.subr.bf16.mxu0 %v4810_v22  ;;  %2499 = vmatpush3.bf16.msra.mxu1 %v2496_v10  ;;  %v4859_v10 = vld [vmem:[#allocation16_spill] sm:$0xff]  ;;  %v4870_v16 = vld [vmem:[#allocation22_spill] sm:$0xff] }
  0xed   : > { %1523 = vmatmul.mubr.f32.gmra.mrb[74].mxu1 %v3634_v35  ;;  %2501 = vmatprep.subr.bf16.mxu1 %v2500_v21  ;;  %v4843_v35 = vld [vmem:[#allocation25_spill] sm:$0xff] }
  0xee   : > { %1258 = vmatmul.mubr.f32.gmra.mrb[10].mxu0 %v3402_v5  ;;  %1527 = vmatprep.mubr.f32.mxu1 %v3740_v9 }
  0xef   : > { %1262 = vmatprep.mubr.f32.mxu0 %v3462_v32  ;;  %2449 = vmatpush1.bf16.msra.mxu0 %v3384_v44  ;;  %v4840_v44 = vld [vmem:[#allocation31_spill] sm:$0xff] }
  0xf0   : > { %2450 = vmatprep.subr.bf16.mxu0 %v4810_v22  ;;  %2503 = vmatpush3.bf16.msra.mxu1 %v2500_v21  ;;  %v4863_v21 = vld [vmem:[#allocation18_spill] sm:$0xff] }
  0xf1   : > { %1528 = vmatmul.mubr.f32.gmra.mrb[76].mxu1 %v3702_v46  ;;  %2505 = vmatprep.subr.bf16.mxu1 %v2504_v33  ;;  %v4842_v46 = vld [vmem:[#allocation9_spill] sm:$0xff] }
  0xf2   : > { %1263 = vmatmul.mubr.f32.gmra.mrb[12].mxu0 %v3433_v19  ;;  %1532 = vmatprep.mubr.f32.mxu1 %v3756_v37 }
  0xf3   : > { %1267 = vmatprep.mubr.f32.mxu0 %v3495_v55  ;;  %2452 = vmatpush1.bf16.msra.mxu0 %v3414_v12  ;;  %v4841_v12 = vld [vmem:[#allocation13_spill] sm:$0xff] }
  0xf4   : > { %2453 = vmatprep.subr.bf16.mxu0 %v4810_v22  ;;  %2507 = vmatpush3.bf16.msra.mxu1 %v2504_v33  ;;  %v4867_v33 = vld [vmem:[#allocation20_spill] sm:$0xff] }
  0xf5   : > { %1533 = vmatmul.mubr.f32.gmra.mrb[78].mxu1 %v3705_v50  ;;  %2509 = vmatprep.subr.bf16.mxu1 %v2508_v49  ;;  %v4844_v50 = vld [vmem:[#allocation11_spill] sm:$0xff] }
  0xf6   : > { %1268 = vmatmul.mubr.f32.gmra.mrb[14].mxu0 %v3466_v30  ;;  %1537 = vmatprep.mubr.f32.mxu1 %v3771_v14 }
  0xf7   : > { %1272 = vmatprep.mubr.f32.mxu0 %v3527_v7  ;;  %2455 = vmatpush1.bf16.msra.mxu0 %v3449_v28  ;;  %v4845_v28 = vld [vmem:[#allocation33_spill] sm:$0xff] }
  0xf8   : > { %2456 = vmatprep.subr.bf16.mxu0 %v4810_v22  ;;  %2511 = vmatpush3.bf16.msra.mxu1 %v2508_v49  ;;  %v4115_v49 = vld [vmem:[%s3033_s5 + $0x198] sm:$0xff] }
  0xf9   : > { %1538 = vmatmul.mubr.f32.gmra.mrb[80].mxu1 %v3743_v27  ;;  %v4848_v27 = vld [vmem:[#allocation28_spill] sm:$0xff] }
  0xfa   : > { %1273 = vmatmul.mubr.f32.gmra.mrb[16].mxu0 %v3498_v56  ;;  %1542 = vmatprep.mubr.f32.mxu1 %v4840_v44 }
  0xfb   : > { %1277 = vmatprep.mubr.f32.mxu0 %v4841_v12  ;;  %2458 = vmatpush1.bf16.msra.mxu0 %v4842_v46  ;;  %v4118_v46 = vld [vmem:[%s3033_s5 + $0x1a0] sm:$0xff] }
  0xfc   : > { %2459 = vmatprep.subr.bf16.mxu0 %v4810_v22 }
  0xfd   : > { %1543 = vmatmul.mubr.f32.gmra.mrb[82].mxu1 %v4843_v35  ;;  %v560_v35 = vrot.slane %v4115_v49, 1 }
  0xfe   : > { %1278 = vmatmul.mubr.f32.gmra.mrb[18].mxu0 %v4844_v50  ;;  %1547 = vmatprep.mubr.f32.mxu1 %v4845_v28 }
  0xff   : > { %1282 = vmatprep.mubr.f32.mxu0 %v4846_v2  ;;  %2461 = vmatpush1.bf16.msra.mxu0 %v4847_v25  ;;  %v561_v25 = vrot.slane %v4118_v46, 1 }
 0x100   : > { %2462 = vmatprep.subr.bf16.mxu0 %v4810_v22 }
 0x101   : > { %1548 = vmatmul.mubr.f32.gmra.mrb[84].mxu1 %v4848_v27  ;;  %v4130_v27 = vld [vmem:[%s3033_s5 + $0x1a8] sm:$0x3] }
 0x102   : > { %1283 = vmatmul.mubr.f32.gmra.mrb[20].mxu0 %v3563_v31  ;;  %1552 = vmatprep.mubr.f32.mxu1 %v4849_v8  ;;  %v4856_v31 = vld [vmem:[#allocation34_spill] sm:$0xff] }
 0x103   : > { %1287 = vmatprep.mubr.f32.mxu0 %v4850_v48  ;;  %2464 = vmatpush1.bf16.msra.mxu0 %v4851_v29  ;;  %v563_v29 = vrot.slane %v4130_v27, 1 }
 0x104   : > { %2465 = vmatprep.subr.bf16.mxu0 %v4810_v22 }
 0x105   : > { %1553 = vmatmul.mubr.f32.gmra.mrb[86].mxu1 %v4852_v41 }
 0x106   : > { %1288 = vmatmul.mubr.f32.gmra.mrb[22].mxu0 %v3596_v24  ;;  %1557 = vmatprep.mubr.f32.mxu1 %v4853_v13  ;;  %v4860_v24 = vld [vmem:[#allocation35_spill] sm:$0xff] }
 0x107   : > { %1292 = vmatprep.mubr.f32.mxu0 %v4854_v62  ;;  %2467 = vmatpush1.bf16.msra.mxu0 %v4855_v42 }
 0x108   : > { %2468 = vmatprep.subr.bf16.mxu0 %v4810_v22 }
 0x109   : > { %1558 = vmatmul.mubr.f32.gmra.mrb[88].mxu1 %v4856_v31  ;;  %v4876_v31 = vld [vmem:[#allocation41_spill] sm:$0xff] }
 0x10a   : > { %1293 = vmatmul.mubr.f32.gmra.mrb[24].mxu0 %v3628_v17  ;;  %1562 = vmatprep.mubr.f32.mxu1 %v4857_v45  ;;  %v4864_v17 = vld [vmem:[#allocation40_spill] sm:$0xff] }
 0x10b   : > { %1297 = vmatprep.mubr.f32.mxu0 %v4858_v57  ;;  %2470 = vmatpush1.bf16.msra.mxu0 %v4859_v10 }
 0x10c   : > { %2471 = vmatprep.subr.bf16.mxu0 %v4810_v22 }
 0x10d   : > { %1563 = vmatmul.mubr.f32.gmra.mrb[90].mxu1 %v4860_v24 }
 0x10e   : > { %1298 = vmatmul.mubr.f32.gmra.mrb[26].mxu0 %v3661_v58  ;;  %1567 = vmatprep.mubr.f32.mxu1 %v4861_v61  ;;  %v4868_v58 = vld [vmem:[#allocation48_spill] sm:$0xff] }
 0x10f   : > { %1302 = vmatprep.mubr.f32.mxu0 %v4862_v34  ;;  %2473 = vmatpush1.bf16.msra.mxu0 %v4863_v21  ;;  %v4877_v21 = vld [vmem:[#allocation43_spill] sm:$0xff] }
 0x110   : > { %2474 = vmatprep.subr.bf16.mxu0 %v4810_v22 }
 0x111   : > { %1568 = vmatmul.mubr.f32.gmra.mrb[92].mxu1 %v4864_v17 }
 0x112   : > { %1303 = vmatmul.mubr.f32.gmra.mrb[28].mxu0 %v3699_v3  ;;  %1572 = vmatprep.mubr.f32.mxu1 %v4865_v39  ;;  %v4871_v3 = vld [vmem:[#allocation27_spill] sm:$0xff] }
 0x113   : > { %1307 = vmatprep.mubr.f32.mxu0 %v4866_v15  ;;  %2476 = vmatpush1.bf16.msra.mxu0 %v4867_v33  ;;  %v4878_v33 = vld [vmem:[#allocation45_spill] sm:$0xff] }
 0x114   : > { %2477 = vmatprep.subr.bf16.mxu0 %v4810_v22  ;;  %v4872_v22 = vld [vmem:[#allocation30_spill] sm:$0xff] }
 0x115   : > { %1573 = vmatmul.mubr.f32.gmra.mrb[94].mxu1 %v3839_v53  ;;  %v543_v53 = vrot.slane %v3929_v1, 1 }
 0x116   : > { %1308 = vmatmul.mubr.f32.gmra.mrb[30].mxu0 %v3722_v63  ;;  %1577 = vmatprep.mubr.f32.mxu1 %v4868_v58  ;;  %v544_v63 = vrot.slane %v3942_v0, 1 }
 0x117   : > { %1312 = vmatprep.mubr.f32.mxu0 %v4869_v23  ;;  %2479 = vmatpush1.bf16.msra.mxu0 %v4870_v16 }
 0x119   : > { %1578 = vmatmul.mubr.f32.gmra.mrb[96].mxu1 %v3867_v51  ;;  %v4104_v51 = vld [vmem:[%s3033_s5 + $0x190] sm:$0x3] }
 0x11a   : > { %1313 = vmatmul.mubr.f32.gmra.mrb[32].mxu0 %v3740_v9  ;;  %1582 = vmatprep.mubr.f32.mxu1 %v3911_v60  ;;  %v4111_v9 = vsel %vm314_vm0, %v543_v53, %v544_v63 }
 0x11b   : > { %1317 = vmatprep.mubr.f32.mxu0 %v4871_v3 }
 0x11d   : > { %1583 = vmatmul.mubr.f32.gmra.mrb[98].mxu1 %v3870_v59  ;;  %v4873_v59 = vld [vmem:[#allocation32_spill] sm:$0xff] }
 0x11e   : > { %1318 = vmatmul.mubr.f32.gmra.mrb[34].mxu0 %v3756_v37  ;;  %1587 = vmatprep.mubr.f32.mxu1 %v3925_v47  ;;  %v546_v37 = vrot.slane %v4104_v51, 1 }
 0x11f   : > { %1322 = vmatprep.mubr.f32.mxu0 %v4872_v22 }
 0x121   : > { %1588 = vmatmul.mubr.f32.gmra.mrb[100].mxu1 %v3898_v20  ;;  %v4125_v20 = vsel %vm314_vm0, %v544_v63, %v546_v37 }
 0x122   : > { %1323 = vmatmul.mubr.f32.gmra.mrb[36].mxu0 %v3771_v14  ;;  %1592 = vmatprep.mubr.f32.mxu1 %v3939_v40  ;;  %v4874_v14 = vld [vmem:[#allocation36_spill] sm:$0xff] }
 0x123   : > { %1327 = vmatprep.mubr.f32.mxu0 %v4873_v59 }
 0x125   : > { %1593 = vmatmul.mubr.f32.gmra.mrb[102].mxu1 %v3901_v11  ;;  %v4875_v11 = vld [vmem:[#allocation38_spill] sm:$0xff] }
 0x126   : > { %1328 = vmatmul.mubr.f32.gmra.mrb[38].mxu0 %v4840_v44  ;;  %1597 = vmatprep.mubr.f32.mxu1 %v4111_v9  ;;  %v562_v44 = vsel %vm314_vm0, %v560_v35, %v561_v25  ;;  %v568_v35 = vrot.slane %v4118_v46, 2 }
 0x127   : > { %1332 = vmatprep.mubr.f32.mxu0 %v4874_v14 }
 0x129   : > { %1598 = vmatmul.mubr.f32.gmra.mrb[104].mxu1 %v3929_v1 }
 0x12a   : > { %1333 = vmatmul.mubr.f32.gmra.mrb[40].mxu0 %v4845_v28  ;;  %1602 = vmatprep.mubr.f32.mxu1 %v4125_v20  ;;  %v564_v28 = vsel %vm314_vm0, %v561_v25, %v563_v29 }
 0x12b   : > { %1337 = vmatprep.mubr.f32.mxu0 %v4875_v11 }
 0x12c   : > { %v4138_v41 = vpop.f32.mrb[0].mxu1 }
 0x12d   : > { %1603 = vmatmul.mubr.f32.gmra.mrb[106].mxu1 %v3942_v0  ;;  %v786_v42 = vpop.f32.mrb[1].mxu1 }
 0x12e   : > { %1338 = vmatmul.mubr.f32.gmra.mrb[42].mxu0 %v4849_v8  ;;  %1607 = vmatprep.mubr.f32.mxu1 %v562_v44  ;;  %v570_v44 = vrot.slane %v4130_v27, 2  ;;  %v2740_v27 = vld [vmem:[%s3033_s5 + $0x80] sm:$0xff] }
 0x12f   : > { %1342 = vmatprep.mubr.f32.mxu0 %v4876_v31 }
 0x130   : > { %v4144_v10 = vpop.f32.mrb[2].mxu1 }
 0x131   : > { %1608 = vmatmul.mubr.f32.gmra.mrb[108].mxu1 %v4115_v49  ;;  %v791_v24 = vpop.f32.mrb[3].mxu1 }
 0x132   : > { %1343 = vmatmul.mubr.f32.gmra.mrb[44].mxu0 %v4853_v13  ;;  %1612 = vmatprep.mubr.f32.mxu1 %v564_v28  ;;  %v4879_v13 = vld [vmem:[#allocation47_spill] sm:$0xff] }
 0x133   : > { %1347 = vmatprep.mubr.f32.mxu0 %v4877_v21 }
 0x134   : > { %v4149_v17 = vpop.f32.mrb[4].mxu1 }
 0x135   : > { %1613 = vmatmul.mubr.f32.gmra.mrb[110].mxu1 %v4118_v46  ;;  %v796_v8 = vpop.f32.mrb[5].mxu1  ;;  %v2739_v46 = vld [vmem:[%s3033_s5 + $0x78] sm:$0xff] }
 0x136   : > { %1348 = vmatmul.mubr.f32.gmra.mrb[46].mxu0 %v4857_v45  ;;  %2240 = vmatprep.mubr.f32.mxu1 %v3332_v36  ;;  %v4880_v36 = vld [vmem:[#allocation49_spill] sm:$0xff] }
 0x137   : > { %1352 = vmatprep.mubr.f32.mxu0 %v4878_v33 }
 0x138   : > { %v4155_v16 = vpop.f32.mrb[6].mxu1 }
 0x139   : > { %2241 = vmatmul.mubr.f32.vlgmr.msra.gmra.mrb[112].mxu1 %v3362_v52  ;;  %v801_v53 = vpop.f32.mrb[7].mxu1 }
 0x13a   : > { %1353 = vmatmul.mubr.f32.gmra.mrb[48].mxu0 %v4861_v61  ;;  %2243 = vmatprep.mubr.f32.mxu1 %v3399_v4  ;;  %v4881_v4 = vld [vmem:[#allocation50_spill] sm:$0xff] }
 0x13b   : > { %1357 = vmatprep.mubr.f32.mxu0 %v4879_v13 }
 0x13c   : > { %v4161_v63 = vpop.f32.mrb[8].mxu1 }
 0x13d   : > { %2244 = vmatmul.mubr.f32.gmra.mrb[114].mxu1 %v3430_v18  ;;  %v806_v45 = vpop.f32.mrb[9].mxu1 }
 0x13e   : > { %1358 = vmatmul.mubr.f32.gmra.mrb[50].mxu0 %v4865_v39  ;;  %2246 = vmatprep.mubr.f32.mxu1 %v3462_v32  ;;  %v550_v32 = vrot.slane %v3929_v1, 2 }
 0x13f   : > { %1362 = vmatprep.mubr.f32.mxu0 %v4880_v36 }
 0x140   : > { %v4167_v37 = vpop.f32.mrb[10].mxu1 }
 0x141   : > { %2247 = vmatmul.mubr.f32.gmra.mrb[116].mxu1 %v3495_v55  ;;  %v811_v52 = vpop.f32.mrb[11].mxu1  ;;  %v551_v55 = vrot.slane %v3942_v0, 2 }
 0x142   : > { %1363 = vmatmul.mubr.f32.gmra.mrb[52].mxu0 %v4868_v58  ;;  %2249 = vmatprep.mubr.f32.mxu1 %v3527_v7 }
 0x143   : > { %1367 = vmatprep.mubr.f32.mxu0 %v4881_v4 }
 0x144   : > { %v4173_v61 = vpop.f32.mrb[12].mxu1 }
 0x145   : > { %2250 = vmatmul.mubr.f32.gmra.mrb[118].mxu1 %v4841_v12  ;;  %v816_v18 = vpop.f32.mrb[13].mxu1  ;;  %v553_v12 = vrot.slane %v4104_v51, 2  ;;  %v2735_v51 = vld [vmem:[%s3033_s5 + $0x48] sm:$0xff] }
 0x146   : > { %1368 = vmatmul.mubr.f32.gmra.mrb[54].mxu0 %v3911_v60  ;;  %2252 = vmatprep.mubr.f32.mxu1 %v4846_v2  ;;  %v552_v60 = vsel %vm427_vm1, %v550_v32, %v551_v55 }
 0x147   : > { %1372 = vmatprep.mubr.f32.mxu0 %v3936_v43 }
 0x148   : > { %v4181_v39 = vpop.f32.mrb[14].mxu1 }
 0x149   : > { %2253 = vmatmul.mubr.f32.gmra.mrb[120].mxu1 %v4850_v48  ;;  %v821_v7 = vpop.f32.mrb[15].mxu1 }
 0x14a   : > { %1373 = vmatmul.mubr.f32.gmra.mrb[56].mxu0 %v3925_v47  ;;  %2255 = vmatprep.mubr.f32.mxu1 %v4854_v62  ;;  %v554_v47 = vsel %vm427_vm1, %v551_v55, %v553_v12 }
 0x14b   : > { %1377 = vmatprep.mubr.f32.mxu0 %v3949_v6 }
 0x14c   : > { %v4189_v2 = vpop.f32.mrb[16].mxu1 }
 0x14d   : > { %2256 = vmatmul.mubr.f32.gmra.mrb[122].mxu1 %v4858_v57  ;;  %v826_v1 = vpop.f32.mrb[17].mxu1 }
 0x14e   : > { %1378 = vmatmul.mubr.f32.gmra.mrb[58].mxu0 %v3939_v40  ;;  %2258 = vmatprep.mubr.f32.mxu1 %v4862_v34 }
 0x14f   : > { %1382 = vmatprep.mubr.f32.mxu0 %v552_v60 }
 0x150   : > { %v4195_v0 = vpop.f32.mrb[18].mxu1 }
 0x151   : > { %2259 = vmatmul.mubr.f32.gmra.mrb[124].mxu1 %v4866_v15  ;;  %v831_v48 = vpop.f32.mrb[19].mxu1  ;;  %v2733_v15 = vld [vmem:[%s3033_s5 + $0x30] sm:$0xff] }
 0x152   : > { %1383 = vmatmul.mubr.f32.gmra.mrb[60].mxu0 %v4111_v9  ;;  %2261 = vmatprep.mubr.f32.mxu1 %v4869_v23  ;;  %v2736_v9 = vld [vmem:[%s3033_s5 + $0x50] sm:$0xff] }
 0x153   : > { %1387 = vmatprep.mubr.f32.mxu0 %v554_v47 }
 0x154   : > { %v4200_v62 = vpop.f32.mrb[20].mxu1 }
 0x155   : > { %2262 = vmatmul.mubr.f32.gmra.mrb[126].mxu1 %v4871_v3  ;;  %v836_v40 = vpop.f32.mrb[21].mxu1  ;;  %v2734_v3 = vld [vmem:[%s3033_s5 + $0x38] sm:$0xff] }
 0x156   : > { %1388 = vmatmul.mubr.f32.gmra.mrb[62].mxu0 %v4125_v20  ;;  %2264 = vmatprep.mubr.f32.mxu1 %v4872_v22  ;;  %v2737_v20 = vld [vmem:[%s3033_s5 + $0x60] sm:$0xff] }
 0x157   : > { %1457 = vmatprep.mubr.f32.mxu0 %v3303_v26 }
 0x158   : > { %v4206_v57 = vpop.f32.mrb[22].mxu1 }
 0x159   : > { %2265 = vmatmul.mubr.f32.gmra.mrb[128].mxu1 %v4873_v59  ;;  %v841_v34 = vpop.f32.mrb[23].mxu1 }
 0x15a   : > { %1458 = vmatmul.mubr.f32.vlgmr.msra.gmra.mrb[0].mxu0 %v2733_v15  ;;  %2267 = vmatprep.mubr.f32.mxu1 %v4874_v14 }
 0x15b   : > { %1462 = vmatprep.mubr.f32.mxu0 %v3336_v38 }
 0x15c   : > { %v4212_v58 = vpop.f32.mrb[24].mxu1 }
 0x15d   : > { %2268 = vmatmul.mubr.f32.gmra.mrb[130].mxu1 %v4875_v11  ;;  %v846_v23 = vpop.f32.mrb[25].mxu1  ;;  %v2738_v11 = vld [vmem:[%s3033_s5 + $0x68] sm:$0xff]  ;;  %s4353_s5 = sand.u32 1, %s2855_s16  }
 0x15e   : > { %1463 = vmatmul.mubr.f32.gmra.mrb[2].mxu0 %v2734_v3  ;;  %2270 = vmatprep.mubr.f32.mxu1 %v4876_v31  ;;  %s2150_s6 = sshll.u32 %s4353_s5, 8  ;;  %s1984_s13 = scalar_lea.sflag [#allocation3], %s4353_s5 }
 0x15f   : > { %1467 = vmatprep.mubr.f32.mxu0 %v3367_v54  ;;  %s4372_s7 = scalar_lea.vmem [#allocation2], %s2150_s6 }
 0x160   : > { %v4218_v26 = vpop.f32.mrb[26].mxu1  ;;  %s2005_s9 = sshll.u32 %s4372_s7, 4  ;;  %s4529_s9 = int_to_ptr.vmem [resolvable:$true] %s2005_s9 }
 0x161   : > { %2271 = vmatmul.mubr.f32.gmra.mrb[132].mxu1 %v4877_v21  ;;  %v851_v22 = vpop.f32.mrb[27].mxu1  ;;  %s2741_s14 = scalar_lea.vmem %s4529_s9, 4096  ;;  %p2748_p0 = scmp.lt.s32.totalorder %s4529_s9, %s2746_s23 }
 0x162   : > { %1468 = vmatmul.mubr.f32.gmra.mrb[4].mxu0 %v2735_v51  ;;  %2273 = vmatprep.mubr.f32.mxu1 %v4878_v33  ;;  %p2742_p11 = scmp.ne.s32.totalorder %s4529_s9, %s2741_s14  ;;  %p2749_p1 = scmp.lt.s32.totalorder %s2747_s27, %s2741_s14 }
 0x163   : > { %1472 = vmatprep.mubr.f32.mxu0 %v3402_v5  ;;  %v567_v5 = vrot.slane %v4115_v49, 2 }
 0x164   : > { %v4224_v38 = vpop.f32.mrb[28].mxu1  ;;  %p2743_p12 = pnand %p2742_p11, %p2936_p5  ;;  %p2750_p2 = por %p2749_p1, %p2748_p0 }
 0x165   : > { %2274 = vmatmul.mubr.f32.gmra.mrb[134].mxu1 %v4879_v13  ;;  %v856_v59 = vpop.f32.mrb[29].mxu1 }
 0x166   : > { %1473 = vmatmul.mubr.f32.gmra.mrb[6].mxu0 %v2736_v9  ;;  %2276 = vmatprep.mubr.f32.mxu1 %v4880_v36  ;;  %p2744_p13 = pneg %p2743_p12 }
 0x167   : > { %1477 = vmatprep.mubr.f32.mxu0 %v3433_v19 }
 0x168   : > { %v4230_v54 = vpop.f32.mrb[30].mxu1  ;;  %p2751_p3 = pnand %p2750_p2, %p2744_p13 }
 0x169   : > { %2277 = vmatmul.mubr.f32.gmra.mrb[136].mxu1 %v4881_v4  ;;  %v861_v14 = vpop.f32.mrb[31].mxu1 }
 0x16a   : > { %1478 = vmatmul.mubr.f32.gmra.mrb[8].mxu0 %v2737_v20  ;;  %2279 = vmatprep.mubr.f32.mxu1 %v3936_v43  ;;  %v569_v43 = vsel %vm427_vm1, %v567_v5, %v568_v35 }
 0x16b   : > { %1482 = vmatprep.mubr.f32.mxu0 %v3466_v30 }
 0x16c   : > { %v4238_v25 = vpop.f32.mrb[32].mxu1 }
 0x16d   : > { %2280 = vmatmul.mubr.f32.gmra.mrb[138].mxu1 %v3949_v6  ;;  %v866_v19 = vpop.f32.mrb[33].mxu1  ;;  %v571_v6 = vsel %vm427_vm1, %v568_v35, %v570_v44 }
 0x16e   : > { %1483 = vmatmul.mubr.f32.gmra.mrb[10].mxu0 %v2738_v11  ;;  %2282 = vmatprep.mubr.f32.mxu1 %v552_v60 }
 0x16f   : > { %1487 = vmatprep.mubr.f32.mxu0 %v3498_v56 }
 0x170   : > { %v4245_v30 = vpop.f32.mrb[34].mxu1 }
 0x171   : > { %2283 = vmatmul.mubr.f32.gmra.mrb[140].mxu1 %v554_v47  ;;  %v871_v49 = vpop.f32.mrb[35].mxu1 }
 0x172   : > { %1488 = vmatmul.mubr.f32.gmra.mrb[12].mxu0 %v2739_v46  ;;  %2285 = vmatprep.mubr.f32.mxu1 %v569_v43 }
 0x173   : > { %1492 = vmatprep.mubr.f32.mxu0 %v4844_v50 }
 0x174   : > { %v4250_v29 = vpop.f32.mrb[36].mxu1 }
 0x175   : > { %2286 = vmatmul.mubr.f32.gmra.mrb[142].mxu1 %v571_v6  ;;  %v876_v42 = vpop.f32.mrb[37].mxu1 }
 0x176   : > { %1493 = vmatmul.mubr.f32.gmra.mrb[14].mxu0 %v2740_v27 }
 0x178   : > { %v4253_v56 = vpop.f32.mrb[38].mxu1 }
 0x179   : > { %v881_v31 = vpop.f32.mrb[39].mxu1 }
 0x17c   : > { %v4255_v28 = vpop.f32.mrb[40].mxu1 }
 0x17d   : > { %v886_v24 = vpop.f32.mrb[41].mxu1 }
 0x180   : > { %v4257_v21 = vpop.f32.mrb[42].mxu1 }
 0x181   : > { %v891_v8 = vpop.f32.mrb[43].mxu1 }
 0x184   : > { %v4259_v33 = vpop.f32.mrb[44].mxu1 }
 0x185   : > { %v896_v53 = vpop.f32.mrb[45].mxu1 }
 0x188   : > { %v4261_v13 = vpop.f32.mrb[46].mxu1 }
 0x189   : > { %v901_v50 = vpop.f32.mrb[47].mxu1 }
 0x18c   : > { %v4263_v45 = vpop.f32.mrb[48].mxu1 }
 0x18d   : > { %v906_v36 = vpop.f32.mrb[49].mxu1 }
 0x190   : > { %v4265_v52 = vpop.f32.mrb[50].mxu1 }
 0x191   : > { %v911_v4 = vpop.f32.mrb[51].mxu1 }
 0x194   : > { %v4267_v18 = vpop.f32.mrb[52].mxu1 }
 0x195   : > { %v916_v32 = vpop.f32.mrb[53].mxu1 }
 0x198   : > { %v4269_v55 = vpop.f32.mrb[54].mxu1 }
 0x199   : > { %v921_v7 = vpop.f32.mrb[55].mxu1 }
 0x19c   : > { %v4271_v60 = vpop.f32.mrb[56].mxu1 }
 0x19d   : > { %v926_v12 = vpop.f32.mrb[57].mxu1 }
 0x1a0   : > { %v4273_v1 = vpop.f32.mrb[58].mxu1 }
 0x1a1   : > { %v931_v47 = vpop.f32.mrb[59].mxu1 }
 0x1a4   : > { %v4275_v48 = vpop.f32.mrb[60].mxu1 }
 0x1a5   : > { %v936_v40 = vpop.f32.mrb[61].mxu1 }
 0x1a8   : > { %v4277_v34 = vpop.f32.mrb[62].mxu1 }
 0x1a9   : > { %v941_v15 = vpop.f32.mrb[63].mxu1 }
 0x1ac   : > { %v1499_v23 = vpop.f32.mrb[64].mxu1 }
 0x1ad   : > { %v1501_v3 = vpop.f32.mrb[65].mxu1 }
 0x1b0   : > { %v1504_v22 = vpop.f32.mrb[66].mxu1 }
 0x1b1   : > { %v1506_v51 = vpop.f32.mrb[67].mxu1 }
 0x1b4   : > { %v1509_v59 = vpop.f32.mrb[68].mxu1 }
 0x1b5   : > { %v1511_v9 = vpop.f32.mrb[69].mxu1 }
 0x1b8   : > { %v1514_v14 = vpop.f32.mrb[70].mxu1 }
 0x1b9   : > { %v1516_v20 = vpop.f32.mrb[71].mxu1 }
 0x1bc   : > { %v1519_v5 = vpop.f32.mrb[72].mxu1 }
 0x1bd   : > { %v1521_v35 = vpop.f32.mrb[73].mxu1 }
 0x1c0   : > { %v1524_v19 = vpop.f32.mrb[74].mxu1 }
 0x1c1   : > { %v1526_v11 = vpop.f32.mrb[75].mxu1 }
 0x1c4   : > { %v1529_v44 = vpop.f32.mrb[76].mxu1 }
 0x1c5   : > { %v1531_v43 = vpop.f32.mrb[77].mxu1 }
 0x1c8   : > { %v1534_v49 = vpop.f32.mrb[78].mxu1 }
 0x1c9   : > { %v1536_v46 = vpop.f32.mrb[79].mxu1 }
 0x1cc   : > { %v1539_v6 = vpop.f32.mrb[80].mxu1 }
 0x1cd   : > { %v1274_v42 = vpop.f32.mrb[16].mxu0  ;;  %v1541_v27 = vpop.f32.mrb[81].mxu1 }
 0x1ce   : > { %v2552_v31 = vadd.f32 %v1274_v42, %v4189_v2  ;;  %v1276_v24 = vpop.f32.mrb[17].mxu0 }
 0x1d0   : > { %v4280_v8 = vadd.f32 %v2552_v31, %v1499_v23  ;;  %v1544_v53 = vpop.f32.mrb[82].mxu1 }
 0x1d1   : > { %v1279_v50 = vpop.f32.mrb[18].mxu0  ;;  %v1546_v36 = vpop.f32.mrb[83].mxu1 }
 0x1d2   : > { %v2554_v4 = vadd.f32 %v1279_v50, %v4195_v0  ;;  %v1281_v32 = vpop.f32.mrb[19].mxu0 }
 0x1d4   : > { %v4283_v7 = vadd.f32 %v2554_v4, %v1504_v22  ;;  %v1549_v12 = vpop.f32.mrb[84].mxu1 }
 0x1d5   : > { %v1284_v47 = vpop.f32.mrb[20].mxu0  ;;  %v1551_v40 = vpop.f32.mrb[85].mxu1 }
 0x1d6   : > { %v2556_v15 = vadd.f32 %v1284_v47, %v4200_v62  ;;  %v1286_v3 = vpop.f32.mrb[21].mxu0 }
 0x1d8   : > { %v4286_v51 = vadd.f32 %v2556_v15, %v1509_v59  ;;  %v1554_v2 = vpop.f32.mrb[86].mxu1 }
 0x1d9   : > { %v1289_v9 = vpop.f32.mrb[22].mxu0  ;;  %v1556_v23 = vpop.f32.mrb[87].mxu1 }
 0x1da   : > { %v2558_v20 = vadd.f32 %v1289_v9, %v4206_v57  ;;  %v1291_v35 = vpop.f32.mrb[23].mxu0 }
 0x1dc   : > { %v4289_v11 = vadd.f32 %v2558_v20, %v1514_v14  ;;  %v1559_v0 = vpop.f32.mrb[88].mxu1 }
 0x1dd   : > { %v1294_v43 = vpop.f32.mrb[24].mxu0  ;;  %v1561_v22 = vpop.f32.mrb[89].mxu1 }
 0x1de   : > { %v2560_v46 = vadd.f32 %v1294_v43, %v4212_v58  ;;  %v1296_v42 = vpop.f32.mrb[25].mxu0 }
 0x1e0   : > { %v4292_v27 = vadd.f32 %v2560_v46, %v1519_v5  ;;  %v1564_v62 = vpop.f32.mrb[90].mxu1 }
 0x1e1   : > { %v1299_v31 = vpop.f32.mrb[26].mxu0  ;;  %v1566_v59 = vpop.f32.mrb[91].mxu1 }
 0x1e2   : > { %v2562_v24 = vadd.f32 %v1299_v31, %v4218_v26  ;;  %v1301_v50 = vpop.f32.mrb[27].mxu0 }
 0x1e4   : > { %v4295_v36 = vadd.f32 %v2562_v24, %v1524_v19  ;;  %v1569_v57 = vpop.f32.mrb[92].mxu1 }
 0x1e5   : > { %v1304_v4 = vpop.f32.mrb[28].mxu0  ;;  %v1571_v14 = vpop.f32.mrb[93].mxu1 }
 0x1e6   : > { %v2564_v32 = vadd.f32 %v1304_v4, %v4224_v38  ;;  %v1306_v47 = vpop.f32.mrb[29].mxu0 }
 0x1e8   : > { %v4298_v40 = vadd.f32 %v2564_v32, %v1529_v44  ;;  %v1574_v58 = vpop.f32.mrb[94].mxu1 }
 0x1e9   : > { %v1309_v15 = vpop.f32.mrb[30].mxu0  ;;  %v1576_v5 = vpop.f32.mrb[95].mxu1 }
 0x1ea   : > { %v2566_v3 = vadd.f32 %v1309_v15, %v4230_v54  ;;  %v1311_v9 = vpop.f32.mrb[31].mxu0 }
 0x1ec   : > { %v4301_v23 = vadd.f32 %v2566_v3, %v1534_v49  ;;  %v1579_v26 = vpop.f32.mrb[96].mxu1 }
 0x1ed   : > { %v1314_v20 = vpop.f32.mrb[32].mxu0  ;;  %v1581_v19 = vpop.f32.mrb[97].mxu1 }
 0x1ee   : > { %v2568_v35 = vadd.f32 %v1314_v20, %v4238_v25  ;;  %v1316_v43 = vpop.f32.mrb[33].mxu0 }
 0x1f0   : > { %v4304_v22 = vadd.f32 %v2568_v35, %v1539_v6  ;;  %v1584_v38 = vpop.f32.mrb[98].mxu1 }
 0x1f1   : > { %v1319_v46 = vpop.f32.mrb[34].mxu0  ;;  %v1586_v44 = vpop.f32.mrb[99].mxu1 }
 0x1f2   : > { %v2570_v42 = vadd.f32 %v1319_v46, %v4245_v30  ;;  %v1321_v31 = vpop.f32.mrb[35].mxu0 }
 0x1f4   : > { %v4307_v59 = vadd.f32 %v2570_v42, %v1544_v53  ;;  %v1589_v54 = vpop.f32.mrb[100].mxu1 }
 0x1f5   : > { %v1324_v24 = vpop.f32.mrb[36].mxu0  ;;  %v1591_v49 = vpop.f32.mrb[101].mxu1 }
 0x1f6   : > { %v2572_v50 = vadd.f32 %v1324_v24, %v4250_v29  ;;  %v1326_v4 = vpop.f32.mrb[37].mxu0 }
 0x1f8   : > { %v4310_v14 = vadd.f32 %v2572_v50, %v1549_v12  ;;  %v1594_v25 = vpop.f32.mrb[102].mxu1 }
 0x1f9   : > { %v1329_v32 = vpop.f32.mrb[38].mxu0  ;;  %v1596_v6 = vpop.f32.mrb[103].mxu1 }
 0x1fa   : > { %v2574_v47 = vadd.f32 %v1329_v32, %v4253_v56  ;;  %v1331_v15 = vpop.f32.mrb[39].mxu0 }
 0x1fc   : > { %v4313_v5 = vadd.f32 %v2574_v47, %v1554_v2  ;;  %v1599_v30 = vpop.f32.mrb[104].mxu1 }
 0x1fd   : > { %v1334_v3 = vpop.f32.mrb[40].mxu0  ;;  %v1601_v53 = vpop.f32.mrb[105].mxu1 }
 0x1fe   : > { %v2576_v9 = vadd.f32 %v1334_v3, %v4255_v28  ;;  %v1336_v20 = vpop.f32.mrb[41].mxu0 }
 0x200   : > { %v4316_v19 = vadd.f32 %v2576_v9, %v1559_v0  ;;  %v4318_v29 = vpop.f32.mrb[106].mxu1 }
 0x201   : > { %v1339_v12 = vpop.f32.mrb[42].mxu0  ;;  %v1606_v35 = vpop.f32.mrb[107].mxu1 }
 0x202   : > { %v2578_v43 = vadd.f32 %v1339_v12, %v4257_v21  ;;  %v1341_v46 = vpop.f32.mrb[43].mxu0 }
 0x204   : > { %v4321_v44 = vpop.f32.mrb[108].mxu1  ;;  %v4323_v56 = vadd.f32 %v2578_v43, %v1564_v62 }
 0x205   : > { %v1344_v2 = vpop.f32.mrb[44].mxu0  ;;  %v1611_v42 = vpop.f32.mrb[109].mxu1 }
 0x206   : > { %v2580_v31 = vadd.f32 %v1344_v2, %v4259_v33  ;;  %v1346_v24 = vpop.f32.mrb[45].mxu0 }
 0x208   : > { %v4326_v28 = vpop.f32.mrb[110].mxu1  ;;  %v4328_v0 = vadd.f32 %v2580_v31, %v1569_v57 }
 0x209   : > { %v1349_v49 = vpop.f32.mrb[46].mxu0  ;;  %v1616_v50 = vpop.f32.mrb[111].mxu1 }
 0x20a   : > { %v2582_v4 = vadd.f32 %v1349_v49, %v4261_v13  ;;  %v1351_v32 = vpop.f32.mrb[47].mxu0 }
 0x20c   : > { %v4331_v21 = vpop.f32.mrb[112].mxu1  ;;  %v4333_v6 = vadd.f32 %v2582_v4, %v1574_v58 }
 0x20d   : > { %v1354_v62 = vpop.f32.mrb[48].mxu0  ;;  %v4335_v47 = vpop.f32.mrb[113].mxu1 }
 0x20e   : > { %v2584_v33 = vadd.f32 %v1354_v62, %v4263_v45  ;;  %v1356_v15 = vpop.f32.mrb[49].mxu0 }
 0x210   : > { %v4338_v3 = vpop.f32.mrb[114].mxu1  ;;  %v4340_v57 = vadd.f32 %v2584_v33, %v1579_v26 }
 0x211   : > { %v1359_v53 = vpop.f32.mrb[50].mxu0  ;;  %v4342_v9 = vpop.f32.mrb[115].mxu1 }
 0x212   : > { %v2586_v13 = vadd.f32 %v1359_v53, %v4265_v52  ;;  %v1361_v20 = vpop.f32.mrb[51].mxu0 }
 0x214   : > { %v4345_v12 = vpop.f32.mrb[116].mxu1  ;;  %v4347_v58 = vadd.f32 %v2586_v13, %v1584_v38 }
 0x215   : > { %v1364_v35 = vpop.f32.mrb[52].mxu0  ;;  %v4349_v43 = vpop.f32.mrb[117].mxu1 }
 0x216   : > { %v2588_v45 = vadd.f32 %v1364_v35, %v4267_v18  ;;  %v1366_v46 = vpop.f32.mrb[53].mxu0 }
 0x218   : > { %v4355_v26 = vpop.f32.mrb[118].mxu1  ;;  %v4357_v2 = vadd.f32 %v2588_v45, %v1589_v54 }
 0x219   : > { %v1369_v42 = vpop.f32.mrb[54].mxu0  ;;  %v4359_v52 = vpop.f32.mrb[119].mxu1 }
 0x21a   : > { %v2590_v38 = vadd.f32 %v1369_v42, %v4269_v55  ;;  %v1371_v31 = vpop.f32.mrb[55].mxu0 }
 0x21c   : > { %v2254_v24 = vpop.f32.mrb[120].mxu1  ;;  %v4363_v49 = vadd.f32 %v2590_v38, %v1594_v25 }
 0x21d   : > { %v1374_v50 = vpop.f32.mrb[56].mxu0  ;;  %v4366_v18 = vadd.f32 %v4283_v7, %v2254_v24  ;;  %v1724_v4 = vpop.f32.mrb[121].mxu1 }
 0x21e   : > { %v2592_v32 = vadd.f32 %v1374_v50, %v4271_v60  ;;  %v1376_v62 = vpop.f32.mrb[57].mxu0  ;;  %v4370_v54 = vadd.f32 %v4280_v8, %v1724_v4 }
 0x21f   : > { %1852 = vst [vmem:[%s4372_s7 + $0x48] sm:$0xff] %v4366_v18 }
 0x220   : > { %1851 = vst [vmem:[%s4372_s7 + $0x40] sm:$0xff] %v4370_v54  ;;  %v2257_v55 = vpop.f32.mrb[122].mxu1  ;;  %v4378_v7 = vadd.f32 %v2592_v32, %v1599_v30 }
 0x221   : > { %v1379_v25 = vpop.f32.mrb[58].mxu0  ;;  %v4381_v60 = vadd.f32 %v4289_v11, %v2257_v55  ;;  %v1734_v8 = vpop.f32.mrb[123].mxu1 }
 0x222   : > { %v2594_v33 = vadd.f32 %v1379_v25, %v4273_v1  ;;  %v1381_v15 = vpop.f32.mrb[59].mxu0  ;;  %v4385_v53 = vadd.f32 %v4286_v51, %v1734_v8 }
 0x223   : > { %1854 = vst [vmem:[%s4372_s7 + $0x58] sm:$0xff] %v4381_v60 }
 0x224   : > { %1853 = vst [vmem:[%s4372_s7 + $0x50] sm:$0xff] %v4385_v53  ;;  %v2260_v13 = vpop.f32.mrb[124].mxu1  ;;  %v4392_v30 = vadd.f32 %v2594_v33, %v4318_v29 }
 0x225   : > { %v1384_v20 = vpop.f32.mrb[60].mxu0  ;;  %v4395_v11 = vadd.f32 %v4295_v36, %v2260_v13  ;;  %v1744_v35 = vpop.f32.mrb[125].mxu1 }
 0x226   : > { %v2596_v1 = vadd.f32 %v1384_v20, %v4275_v48  ;;  %v1386_v45 = vpop.f32.mrb[61].mxu0  ;;  %v4399_v51 = vadd.f32 %v4292_v27, %v1744_v35 }
 0x227   : > { %1856 = vst [vmem:[%s4372_s7 + $0x68] sm:$0xff] %v4395_v11 }
 0x228   : > { %1855 = vst [vmem:[%s4372_s7 + $0x60] sm:$0xff] %v4399_v51  ;;  %v2263_v46 = vpop.f32.mrb[126].mxu1  ;;  %v4406_v29 = vadd.f32 %v2596_v1, %v4321_v44 }
 0x229   : > { %v1389_v42 = vpop.f32.mrb[62].mxu0  ;;  %v4409_v36 = vadd.f32 %v4301_v23, %v2263_v46  ;;  %v1754_v38 = vpop.f32.mrb[127].mxu1 }
 0x22a   : > { %v2598_v48 = vadd.f32 %v1389_v42, %v4277_v34  ;;  %v1391_v31 = vpop.f32.mrb[63].mxu0  ;;  %v4413_v27 = vadd.f32 %v4298_v40, %v1754_v38 }
 0x22b   : > { %1858 = vst [vmem:[%s4372_s7 + $0x78] sm:$0xff] %v4409_v36 }
 0x22c   : > { %1857 = vst [vmem:[%s4372_s7 + $0x70] sm:$0xff] %v4413_v27  ;;  %v2266_v44 = vpop.f32.mrb[128].mxu1  ;;  %v4420_v24 = vadd.f32 %v2598_v48, %v4326_v28 }
 0x22d   : > { %v1459_v50 = vpop.f32.mrb[0].mxu0  ;;  %v4423_v23 = vadd.f32 %v4307_v59, %v2266_v44  ;;  %v1764_v4 = vpop.f32.mrb[129].mxu1 }
 0x22e   : > { %v2544_v34 = vadd.f32 %v1459_v50, %v4138_v41  ;;  %v1461_v40 = vpop.f32.mrb[1].mxu0  ;;  %v4427_v32 = vadd.f32 %v4304_v22, %v1764_v4 }
 0x22f   : > { %1860 = vst [vmem:[%s4372_s7 + $0x88] sm:$0xff] %v4423_v23 }
 0x230   : > { %v1685_v62 = vadd.f32 %v2544_v34, %v4335_v47  ;;  %1859 = vst [vmem:[%s4372_s7 + $0x80] sm:$0xff] %v4427_v32  ;;  %v2269_v28 = vpop.f32.mrb[130].mxu1 }
 0x231   : > { %v1464_v55 = vpop.f32.mrb[2].mxu0  ;;  %v4435_v59 = vadd.f32 %v4313_v5, %v2269_v28  ;;  %v1774_v25 = vpop.f32.mrb[131].mxu1 }
 0x232   : > { %1843 = vst [vmem:[%s4372_s7] sm:$0xff] %v1685_v62  ;;  %v2545_v41 = vadd.f32 %v1464_v55, %v4144_v10  ;;  %v1466_v8 = vpop.f32.mrb[3].mxu0  ;;  %v4440_v22 = vadd.f32 %v4310_v14, %v1774_v25  ;;  %v1912_v15 = vmul.f32 %v1685_v62, %v1685_v62 }
 0x233   : > { %1862 = vst [vmem:[%s4372_s7 + $0x98] sm:$0xff] %v4435_v59 }
 0x234   : > { %v1690_v47 = vadd.f32 %v2545_v41, %v4331_v21  ;;  %1861 = vst [vmem:[%s4372_s7 + $0x90] sm:$0xff] %v4440_v22  ;;  %v2272_v33 = vpop.f32.mrb[132].mxu1 }
 0x235   : > { %v1469_v5 = vpop.f32.mrb[4].mxu0  ;;  %v4448_v13 = vadd.f32 %v4323_v56, %v2272_v33  ;;  %v1784_v10 = vpop.f32.mrb[133].mxu1 }
 0x236   : > { %1844 = vst [vmem:[%s4372_s7 + $0x8] sm:$0xff] %v1690_v47  ;;  %v1875_v20 = vadd.f32 %v1690_v47, %v1685_v62  ;;  %v1913_v35 = vmul.f32 %v1690_v47, %v1690_v47  ;;  %v2546_v14 = vadd.f32 %v1469_v5, %v4149_v17  ;;  %v1471_v1 = vpop.f32.mrb[5].mxu0  ;;  %v4453_v21 = vadd.f32 %v4316_v19, %v1784_v10 }
 0x237   : > { %1864 = vst [vmem:[%s4372_s7 + $0xa8] sm:$0xff] %v4448_v13 }
 0x238   : > { %v1944_v45 = vadd.f32 %v1913_v35, %v1912_v15  ;;  %v1695_v46 = vadd.f32 %v2546_v14, %v4342_v9  ;;  %1863 = vst [vmem:[%s4372_s7 + $0xa0] sm:$0xff] %v4453_v21  ;;  %v2275_v56 = vpop.f32.mrb[134].mxu1 }
 0x239   : > { %v1474_v42 = vpop.f32.mrb[6].mxu0  ;;  %v4461_v38 = vadd.f32 %v4333_v6, %v2275_v56  ;;  %v1794_v17 = vpop.f32.mrb[135].mxu1 }
 0x23a   : > { %1845 = vst [vmem:[%s4372_s7 + $0x10] sm:$0xff] %v1695_v46  ;;  %v1876_v48 = vadd.f32 %v1875_v20, %v1695_v46  ;;  %v1914_v31 = vmul.f32 %v1695_v46, %v1695_v46  ;;  %v2547_v19 = vadd.f32 %v1474_v42, %v4155_v16  ;;  %v1476_v44 = vpop.f32.mrb[7].mxu0  ;;  %v4466_v50 = vadd.f32 %v4328_v0, %v1794_v17 }
 0x23b   : > { %1866 = vst [vmem:[%s4372_s7 + $0xb8] sm:$0xff] %v4461_v38 }
 0x23c   : > { %v1945_v9 = vadd.f32 %v1944_v45, %v1914_v31  ;;  %v1700_v4 = vadd.f32 %v2547_v19, %v4338_v3  ;;  %1865 = vst [vmem:[%s4372_s7 + $0xb0] sm:$0xff] %v4466_v50  ;;  %v2278_v6 = vpop.f32.mrb[136].mxu1 }
 0x23d   : > { %v1479_v34 = vpop.f32.mrb[8].mxu0  ;;  %v4474_v40 = vadd.f32 %v4347_v58, %v2278_v6  ;;  %v1804_v16 = vpop.f32.mrb[137].mxu1 }
 0x23e   : > { %1846 = vst [vmem:[%s4372_s7 + $0x18] sm:$0xff] %v1700_v4  ;;  %v1877_v62 = vadd.f32 %v1876_v48, %v1700_v4  ;;  %v1915_v28 = vmul.f32 %v1700_v4, %v1700_v4  ;;  %v2548_v0 = vadd.f32 %v1479_v34, %v4161_v63  ;;  %v1481_v55 = vpop.f32.mrb[9].mxu0  ;;  %v4479_v25 = vadd.f32 %v4340_v57, %v1804_v16 }
 0x23f   : > { %1868 = vst [vmem:[%s4372_s7 + $0xc8] sm:$0xff] %v4474_v40 }
 0x240   : > { %v1946_v3 = vadd.f32 %v1945_v9, %v1915_v28  ;;  %v1705_v41 = vadd.f32 %v2548_v0, %v4349_v43  ;;  %1867 = vst [vmem:[%s4372_s7 + $0xc0] sm:$0xff] %v4479_v25  ;;  %v2281_v58 = vpop.f32.mrb[138].mxu1 }
 0x241   : > { %v1484_v8 = vpop.f32.mrb[10].mxu0  ;;  %v4487_v47 = vadd.f32 %v4363_v49, %v2281_v58  ;;  %v1814_v63 = vpop.f32.mrb[139].mxu1 }
 0x242   : > { %1847 = vst [vmem:[%s4372_s7 + $0x20] sm:$0xff] %v1705_v41  ;;  %v1878_v33 = vadd.f32 %v1877_v62, %v1705_v41  ;;  %v1916_v15 = vmul.f32 %v1705_v41, %v1705_v41  ;;  %v2549_v57 = vadd.f32 %v1484_v8, %v4167_v37  ;;  %v1486_v5 = vpop.f32.mrb[11].mxu0  ;;  %v4492_v10 = vadd.f32 %v4357_v2, %v1814_v63 }
 0x243   : > { %1870 = vst [vmem:[%s4372_s7 + $0xd8] sm:$0xff] %v4487_v47 }
 0x244   : > { %v1947_v43 = vadd.f32 %v1946_v3, %v1916_v15  ;;  %v1710_v20 = vadd.f32 %v2549_v57, %v4345_v12  ;;  %1869 = vst [vmem:[%s4372_s7 + $0xd0] sm:$0xff] %v4492_v10  ;;  %v2284_v49 = vpop.f32.mrb[140].mxu1 }
 0x245   : > { %v1489_v35 = vpop.f32.mrb[12].mxu0  ;;  %v4500_v14 = vadd.f32 %v4392_v30, %v2284_v49  ;;  %v1824_v37 = vpop.f32.mrb[141].mxu1 }
 0x246   : > { %1848 = vst [vmem:[%s4372_s7 + $0x28] sm:$0xff] %v1710_v20  ;;  %v1879_v2 = vadd.f32 %v1878_v33, %v1710_v20  ;;  %v1917_v1 = vmul.f32 %v1710_v20, %v1710_v20  ;;  %v2550_v45 = vadd.f32 %v1489_v35, %v4173_v61  ;;  %v1491_v46 = vpop.f32.mrb[13].mxu0  ;;  %v4505_v56 = vadd.f32 %v4378_v7, %v1824_v37 }
 0x247   : > { %1872 = vst [vmem:[%s4372_s7 + $0xe8] sm:$0xff] %v4500_v14 }
 0x248   : > { %v1948_v12 = vadd.f32 %v1947_v43, %v1917_v1  ;;  %v1715_v42 = vadd.f32 %v2550_v45, %v4359_v52  ;;  %1871 = vst [vmem:[%s4372_s7 + $0xe0] sm:$0xff] %v4505_v56  ;;  %v2287_v30 = vpop.f32.mrb[142].mxu1 }
 0x249   : > { %v1494_v17 = vpop.f32.mrb[14].mxu0  ;;  %v4515_v61 = vadd.f32 %v4420_v24, %v2287_v30  ;;  %v1834_v48 = vpop.f32.mrb[143].mxu1 }
 0x24a   : > { %1849 = vst [vmem:[%s4372_s7 + $0x30] sm:$0xff] %v1715_v42  ;;  %v1880_v7 = vadd.f32 %v1879_v2, %v1715_v42  ;;  %v1918_v31 = vmul.f32 %v1715_v42, %v1715_v42  ;;  %v2551_v19 = vadd.f32 %v1494_v17, %v4181_v39  ;;  %v1496_v52 = vpop.f32.mrb[15].mxu0  ;;  %v4520_v44 = vadd.f32 %v4406_v29, %v1834_v48 }
 0x24b   : > { %1874 = vst [vmem:[%s4372_s7 + $0xf8] sm:$0xff] %v4515_v61 }
 0x24c   : > { %v1949_v24 = vadd.f32 %v1948_v12, %v1918_v31  ;;  %v1720_v9 = vadd.f32 %v2551_v19, %v4355_v26  ;;  %1873 = vst [vmem:[%s4372_s7 + $0xf0] sm:$0xff] %v4520_v44 }
 0x24e   : > { %1850 = vst [vmem:[%s4372_s7 + $0x38] sm:$0xff] %v1720_v9  ;;  %v1881_v39 = vadd.f32 %v1880_v7, %v1720_v9  ;;  %v1919_v29 = vmul.f32 %v1720_v9, %v1720_v9 }
 0x24f   : > { %2754 = shalt.err (!%p2751_p3)
}
 0x250   : > { %s2755_s28 = scalar_lea.hbm %s4527_s12, 4096  ;;  %s2759_s6 = scalar_lea.hbm %s4720_s2, 8192 }
 0x251   : > { %p2756_p4 = scmp.ne.s32.totalorder %s4527_s12, %s2755_s28  ;;  %p2760_p9 = scmp.lt.u32.totalorder %s4527_s12, %s4720_s2 }
 0x252   : > { %p2761_p10 = scmp.lt.u32.totalorder %s2759_s6, %s2755_s28  ;;  %p2763_p12 = scmp.lt.u32.totalorder %s2755_s28, %s4527_s12 }
 0x253   : > { %p2757_p7 = pnand %p2756_p4, %p2936_p5 }
 0x254   : > { %p2762_p11 = por %p2761_p10, %p2760_p9 }
 0x255   : > { %p2758_p8 = pneg %p2757_p7 }
 0x256   : > { %p2764_p13 = por %p2763_p12, %p2762_p11 }
 0x258   : > { %p2765_p0 = pnand %p2764_p13, %p2758_p8 }
 0x25a   : > { %2768 = shalt.err (!%p2765_p0)
}
 0x25b   : > { %s2867_s11 = smov 128   ;;  %s2868_s10 = smov 8   ;;  %v1920_v26 = vmul.f32 %v4370_v54, %v4370_v54  ;;  %v1882_v4 = vadd.f32 %v1881_v39, %v4370_v54  ;;  %v1950_v6 = vadd.f32 %v1949_v24, %v1919_v29  ;;  %v1921_v34 = vmul.f32 %v4366_v18, %v4366_v18 }
 0x25c   : > { %2681 = dma.vmem_to_hbm [thread:$0]  (%p2936_p5), %s4529_s9, 4096, %s4527_s12, %s1984_s13, %s2867_s11, %s2867_s11, %s2868_s10   ;;  %v1922_v28 = vmul.f32 %v4385_v53, %v4385_v53  ;;  %v1923_v3 = vmul.f32 %v4381_v60, %v4381_v60  ;;  %v1924_v54 = vmul.f32 %v4399_v51, %v4399_v51 }
 0x25d   : > { %v1883_v16 = vadd.f32 %v1882_v4, %v4366_v18  ;;  %v1951_v62 = vadd.f32 %v1950_v6, %v1920_v26  ;;  %v1925_v18 = vmul.f32 %v4395_v11, %v4395_v11  ;;  %s1988_s9 = sand.u32 1, %s2917_s19   ;;  %s2155_s12 = sshll.u32 %s2917_s19, 4 }
 0x25e   : > { %s200_s13 = scalar_lea.vmem [#allocation4], %s4353_s5  ;;  %s206_s22 = scalar_lea.vmem [#allocation6], %s4353_s5 }
 0x25f   : > { %v1884_v0 = vadd.f32 %v1883_v16, %v4385_v53  ;;  %v1952_v55 = vadd.f32 %v1951_v62, %v1921_v34  ;;  %v1926_v53 = vmul.f32 %v4413_v27, %v4413_v27  ;;  %s2021_s14 = sshll.u32 %s200_s13, 4  ;;  %s2034_s23 = sshll.u32 %s206_s22, 4  ;;  %s4642_s14 = int_to_ptr.vmem [resolvable:$true] %s2021_s14  ;;  %s4649_s23 = int_to_ptr.vmem [resolvable:$true] %s2034_s23 }
 0x260   : > { %s4640_s29 = scalar_lea.hbm %s4721_s3, %s2155_s12  ;;  %s4647_s6 = scalar_lea.hbm %s4722_s4, %s2155_s12 }
 0x261   : > { %v1885_v41 = vadd.f32 %v1884_v0, %v4381_v60  ;;  %v1953_v58 = vadd.f32 %v1952_v55, %v1922_v28  ;;  %v1927_v60 = vmul.f32 %v4409_v36, %v4409_v36  ;;  %s4651_s7 = scalar_lea.sflag [#allocation5], %s1988_s9  ;;  %s2769_s8 = scalar_lea.vmem %s4642_s14, 16 }
 0x262   : > { %p2770_p1 = scmp.ne.s32.totalorder %s4642_s14, %s2769_s8  ;;  %s2869_s11 = smov [#allocation4]  }
 0x263   : > { %v1886_v8 = vadd.f32 %v1885_v41, %v4399_v51  ;;  %v1954_v63 = vadd.f32 %v1953_v58, %v1923_v3  ;;  %v1928_v51 = vmul.f32 %v4427_v32, %v4427_v32  ;;  %v1943_v3 = vmul.f32 %v4515_v61, %v4515_v61  ;;  %s2773_s10 = sshll.u32 %s2869_s11, 4  ;;  %s2774_s10 = int_to_ptr.vmem [resolvable:$false] %s2773_s10 }
 0x264   : > { %p2771_p2 = pnand %p2770_p1, %p2936_p5  ;;  %s2775_s27 = scalar_lea.vmem %s2774_s10, 32 }
 0x265   : > { %v1887_v33 = vadd.f32 %v1886_v8, %v4395_v11  ;;  %v1955_v15 = vadd.f32 %v1954_v63, %v1924_v54  ;;  %v1929_v11 = vmul.f32 %v4423_v23, %v4423_v23  ;;  %p2776_p4 = scmp.lt.s32.totalorder %s4642_s14, %s2774_s10  ;;  %p2777_p7 = scmp.lt.s32.totalorder %s2775_s27, %s2769_s8 }
 0x266   : > { %p2772_p3 = pneg %p2771_p2 }
 0x267   : > { %v1888_v57 = vadd.f32 %v1887_v33, %v4413_v27  ;;  %v1956_v5 = vadd.f32 %v1955_v15, %v1925_v18  ;;  %v1930_v27 = vmul.f32 %v4440_v22, %v4440_v22  ;;  %p2778_p8 = por %p2777_p7, %p2776_p4 }
 0x269   : > { %v1889_v43 = vadd.f32 %v1888_v57, %v4409_v36  ;;  %v1957_v20 = vadd.f32 %v1956_v5, %v1926_v53  ;;  %v1931_v36 = vmul.f32 %v4435_v59, %v4435_v59  ;;  %p2779_p9 = pnand %p2778_p8, %p2772_p3 }
 0x26b   : > { %v1890_v49 = vadd.f32 %v1889_v43, %v4427_v32  ;;  %v1958_v35 = vadd.f32 %v1957_v20, %v1927_v60  ;;  %v1932_v32 = vmul.f32 %v4453_v21, %v4453_v21 }
 0x26d   : > { %v1891_v37 = vadd.f32 %v1890_v49, %v4423_v23  ;;  %v1959_v2 = vadd.f32 %v1958_v35, %v1928_v51  ;;  %v1933_v23 = vmul.f32 %v4448_v13, %v4448_v13 }
 0x26f   : > { %v1960_v1 = vadd.f32 %v1959_v2, %v1929_v11  ;;  %v1892_v45 = vadd.f32 %v1891_v37, %v4440_v22  ;;  %v1934_v22 = vmul.f32 %v4466_v50, %v4466_v50 }
 0x271   : > { %v1893_v46 = vadd.f32 %v1892_v45, %v4435_v59  ;;  %v1961_v12 = vadd.f32 %v1960_v1, %v1930_v27  ;;  %v1935_v59 = vmul.f32 %v4461_v38, %v4461_v38 }
 0x273   : > { %v1894_v42 = vadd.f32 %v1893_v46, %v4453_v21  ;;  %v1962_v30 = vadd.f32 %v1961_v12, %v1931_v36  ;;  %v1936_v21 = vmul.f32 %v4479_v25, %v4479_v25 }
 0x275   : > { %v1895_v17 = vadd.f32 %v1894_v42, %v4448_v13  ;;  %v1963_v48 = vadd.f32 %v1962_v30, %v1932_v32  ;;  %v1937_v13 = vmul.f32 %v4474_v40, %v4474_v40 }
 0x277   : > { %v1896_v7 = vadd.f32 %v1895_v17, %v4466_v50  ;;  %v1964_v31 = vadd.f32 %v1963_v48, %v1933_v23  ;;  %v1938_v50 = vmul.f32 %v4492_v10, %v4492_v10 }
 0x279   : > { %v1897_v19 = vadd.f32 %v1896_v7, %v4461_v38  ;;  %v1965_v52 = vadd.f32 %v1964_v31, %v1934_v22  ;;  %v1939_v38 = vmul.f32 %v4487_v47, %v4487_v47 }
 0x27b   : > { %v1898_v24 = vadd.f32 %v1897_v19, %v4479_v25  ;;  %v1966_v9 = vadd.f32 %v1965_v52, %v1935_v59  ;;  %v1940_v25 = vmul.f32 %v4505_v56, %v4505_v56 }
 0x27d   : > { %v1899_v39 = vadd.f32 %v1898_v24, %v4474_v40  ;;  %v1967_v29 = vadd.f32 %v1966_v9, %v1936_v21  ;;  %v1941_v40 = vmul.f32 %v4500_v14, %v4500_v14 }
 0x27f   : > { %v1900_v26 = vadd.f32 %v1899_v39, %v4492_v10  ;;  %v1968_v4 = vadd.f32 %v1967_v29, %v1937_v13 }
 0x281   : > { %v1901_v6 = vadd.f32 %v1900_v26, %v4487_v47  ;;  %v1969_v34 = vadd.f32 %v1968_v4, %v1938_v50  ;;  %v1942_v47 = vmul.f32 %v4520_v44, %v4520_v44 }
 0x283   : > { %v1902_v16 = vadd.f32 %v1901_v6, %v4505_v56  ;;  %v1970_v62 = vadd.f32 %v1969_v34, %v1939_v38 }
 0x285   : > { %v1903_v28 = vadd.f32 %v1902_v16, %v4500_v14  ;;  %v1971_v10 = vadd.f32 %v1970_v62, %v1940_v25 }
 0x287   : > { %v1904_v0 = vadd.f32 %v1903_v28, %v4520_v44  ;;  %v1972_v55 = vadd.f32 %v1971_v10, %v1941_v40 }
 0x289   : > { %v1905_v56 = vadd.f32 %v1904_v0, %v4515_v61  ;;  %v1973_v41 = vadd.f32 %v1972_v55, %v1942_v47 }
 0x28b   : > { %v1906_v58 = vrot.slane %v1905_v56, 4  ;;  %v1974_v54 = vadd.f32 %v1973_v41, %v1943_v3 }
 0x28d   : > { %v1907_v14 = vadd.f32 %v1906_v58, %v1905_v56  ;;  %v1975_v8 = vrot.slane %v1974_v54, 4 }
 0x28f   : > { %v1976_v63 = vadd.f32 %v1975_v8, %v1974_v54  ;;  %v1908_v18 = vrot.slane %v1907_v14, 2 }
 0x291   : > { %v1909_v33 = vadd.f32 %v1908_v18, %v1907_v14  ;;  %v1977_v15 = vrot.slane %v1976_v63, 2 }
 0x293   : > { %v1910_v44 = vrot.slane %v1909_v33, 1  ;;  %v1978_v53 = vadd.f32 %v1977_v15, %v1976_v63 }
 0x295   : > { %v1911_v61 = vadd.f32 %v1910_v44, %v1909_v33  ;;  %v1979_v57 = vrot.slane %v1978_v53, 1 }
 0x297   : > { %1981 = vst [vmem:[%s200_s13] sm:$0x1] %v1911_v61  ;;  %v1980_v5 = vadd.f32 %v1979_v57, %v1978_v53 }
 0x298   : > { %2782 = shalt.err (!%p2779_p9)
}
 0x299   : > { %s2783_s9 = scalar_lea.hbm %s4640_s29, 16  ;;  %s2787_s28 = scalar_lea.hbm %s4721_s3, 32 }
 0x29a   : > { %p2784_p10 = scmp.ne.s32.totalorder %s4640_s29, %s2783_s9  ;;  %p2788_p13 = scmp.lt.u32.totalorder %s4640_s29, %s4721_s3 }
 0x29b   : > { %p2789_p0 = scmp.lt.u32.totalorder %s2787_s28, %s2783_s9  ;;  %p2791_p2 = scmp.lt.u32.totalorder %s2783_s9, %s4640_s29 }
 0x29c   : > { %p2785_p11 = pnand %p2784_p10, %p2936_p5 }
 0x29d   : > { %p2790_p1 = por %p2789_p0, %p2788_p13 }
 0x29e   : > { %p2786_p12 = pneg %p2785_p11 }
 0x29f   : > { %p2792_p3 = por %p2791_p2, %p2790_p1 }
 0x2a1   : > { %p2793_p4 = pnand %p2792_p3, %p2786_p12 }
 0x2a3   : > { %2796 = shalt.err (!%p2793_p4)
}
 0x2a4   : > { %2682 = dma.vmem_to_hbm [thread:$0]  (%p2936_p5), %s4642_s14, 16, %s4640_s29, %s4651_s7   ;;  %1982 = vst [vmem:[%s206_s22] sm:$0x1] %v1980_v5 }
 0x2a5   : > { %s2797_s8 = scalar_lea.vmem %s4649_s23, 16  ;;  %s2870_s11 = smov [#allocation6]  }
 0x2a6   : > { %p2798_p7 = scmp.ne.s32.totalorder %s4649_s23, %s2797_s8  ;;  %s2801_s10 = sshll.u32 %s2870_s11, 4  ;;  %s2802_s10 = int_to_ptr.vmem [resolvable:$false] %s2801_s10 }
 0x2a7   : > { %s2803_s27 = scalar_lea.vmem %s2802_s10, 32  ;;  %p2804_p10 = scmp.lt.s32.totalorder %s4649_s23, %s2802_s10 }
 0x2a8   : > { %p2799_p8 = pnand %p2798_p7, %p2936_p5  ;;  %p2805_p11 = scmp.lt.s32.totalorder %s2803_s27, %s2797_s8 }
 0x2aa   : > { %p2800_p9 = pneg %p2799_p8  ;;  %p2806_p12 = por %p2805_p11, %p2804_p10 }
 0x2ac   : > { %p2807_p13 = pnand %p2806_p12, %p2800_p9 }
 0x2ae   : > { %2810 = shalt.err (!%p2807_p13)
}
 0x2af   : > { %s2811_s5 = scalar_lea.hbm %s4647_s6, 16  ;;  %s2815_s29 = scalar_lea.hbm %s4722_s4, 32 }
 0x2b0   : > { %p2812_p0 = scmp.ne.s32.totalorder %s4647_s6, %s2811_s5  ;;  %p2816_p3 = scmp.lt.u32.totalorder %s4647_s6, %s4722_s4 }
 0x2b1   : > { %p2817_p4 = scmp.lt.u32.totalorder %s2815_s29, %s2811_s5  ;;  %p2819_p8 = scmp.lt.u32.totalorder %s2811_s5, %s4647_s6 }
 0x2b2   : > { %p2813_p1 = pnand %p2812_p0, %p2936_p5 }
 0x2b3   : > { %p2818_p7 = por %p2817_p4, %p2816_p3 }
 0x2b4   : > { %p2814_p2 = pneg %p2813_p1 }
 0x2b5   : > { %p2820_p9 = por %p2819_p8, %p2818_p7 }
 0x2b7   : > { %p2821_p10 = pnand %p2820_p9, %p2814_p2 }
 0x2b9   : > { %2824 = shalt.err (!%p2821_p10)
}
 0x2ba   : > { %2683 = dma.vmem_to_hbm [thread:$0]  (%p2936_p5), %s4649_s23, 16, %s4647_s6, %s4651_s7  }
 0x2bb PF: > { %p2697_p11 = scmp.ge.s32.totalorder %s2863_s18, 2  ;;  %s2046_s13 = sand.u32 1, %s2851_s15  }
 0x2bc   : > { %s2047_s28 = scalar_lea.sflag [#allocation3], %s2046_s13 }
 0x2bd   : > { %p2688_p12 = pnand %p2697_p11, %p2940_p6 }
 0x2bf   : > { %2842 = dma.done.wait (!%p2688_p12), %s2047_s28, 4096  }
 0x2c0   : > { %2844 = vsyncadd (!%p2688_p12), %s2047_s28, 4294963200  ;;  %s2055_s19 = sand.u32 1, %s2146_s20  }
 0x2c1   : > { %s2056_s30 = scalar_lea.sflag [#allocation5], %s2055_s19 }
 0x2c2   : > { %2846 = dma.done.wait (!%p2688_p12), %s2056_s30, 32  }
 0x2c3   : > { %2848 = vsyncadd (!%p2688_p12), %s2056_s30, 4294967264  ;;  %p18_p5 = scmp.ge.s32.totalorder %s2921_s21, 4   ;;  %s4882_s15 = smov %s2855_s16 }
 0x2c4   : > { %s4883_s16 = smov %s2859_s17  ;;  %s4884_s17 = smov %s2934_s24 }
 0x2c5   : > { %s4885_s18 = smov %s2921_s21  ;;  %20 = sbr.rel (!%p18_p5) target bundleno = 5 (0x5), region = 95 }
 0x2cc   :  { %2068 = vsyncpa [#allocation3], 1 }
 0x2cd   :  { %2070 = vsyncpa [#allocation3 + $0x1], 1 }
 0x2ce   :  { %2071 = vsyncpa [#allocation5], 1 }
 0x2cf   :  { %2073 = vsyncpa [#allocation5 + $0x1], 1 }

</bundles_post_ra>
